<compile_context>
chip_gen: v6e
topology: v6e:2x2x1
jax: 0.10.0
libtpu: 0.0.40
codegen_flags: <defaults>
</compile_context>

<pallas_src>
import functools
import math

import jax
import jax.numpy as jnp
from jax import lax
from jax.experimental import pallas as pl
from jax.experimental.pallas import tpu as pltpu

VMEM_SPEC = pl.BlockSpec(memory_space=pltpu.MemorySpace.VMEM)
BF16 = jnp.bfloat16
F32 = jnp.float32


# ----------------------------- in-kernel helpers ----------------------------------

def _layer_norm(x, gamma, beta, eps):
    mean = jnp.mean(x, axis=-1, keepdims=True)
    var = jnp.mean((x - mean) ** 2, axis=-1, keepdims=True)
    return (x - mean) * lax.rsqrt(var + eps) * gamma + beta


def _gelu(x):
    # TODO(synk): torch.nn.GELU() defaults to exact erf GELU; Mosaic-safe tanh approx
    # is used here (max abs diff ~1e-3).
    return jax.nn.gelu(x, approximate=True)


# ----------------------------- fused BERT encoder + pooling ------------------------

def _encoder_kernel(emb_ref, mask_ref, elng_ref, elnb_ref,
                    wqkv_ref, bqkv_ref, wo_ref, bo_ref,
                    ln1g_ref, ln1b_ref, w1_ref, b1_ref, w2_ref, b2_ref,
                    ln2g_ref, ln2b_ref,
                    pooled_ref, h_scr, ctx_scr,
                    *, num_heads, head_dim, ln_eps):
    layer = pl.program_id(1)
    last_layer = pl.num_programs(1) - 1
    D = num_heads * head_dim
    Bc, S, _ = h_scr.shape

    # Layer 0: fused embedding LayerNorm initializes the VMEM-resident hidden state,
    # which then persists across the (arbitrary) layer axis.
    @pl.when(layer == 0)
    def _():
        h_scr[...] = _layer_norm(emb_ref[...], elng_ref[...], elnb_ref[...], ln_eps)

    for b in range(Bc):
        h = h_scr[b]                       # (S, D) f32 hidden state for this sequence
        mrow = mask_ref[b]                 # (1, S) f32 {0,1} attention mask
        # Additive key bias, broadcast hoisted out of the per-head loop (emitted once).
        bias_full = jnp.broadcast_to((1.0 - mrow) * (-1e9), (S, S))

        # Fused QKV projection: bf16 MXU, f32 accumulation.  The 1/sqrt(head_dim)
        # scale is already folded into the Q third of wqkv/bqkv.
        qkv = jnp.dot(h.astype(BF16), wqkv_ref[0],
                      preferred_element_type=F32) + bqkv_ref[0]       # (S, 3D) f32
        q = qkv[:, :D]
        k = qkv[:, D:2 * D]
        v = qkv[:, 2 * D:]

        # TODO(synk): heads are processed in a static unrolled loop with head_dim-lane
        # slices; at production H/S a head-batched (H, S, hd) layout with 128-lane head
        # groups would further reduce vreg pressure and masked partial stores.
        for hh in range(num_heads):
            sl = slice(hh * head_dim, (hh + 1) * head_dim)
            qh = q[:, sl].astype(BF16)
            kh = k[:, sl].astype(BF16)
            vh = v[:, sl].astype(BF16)
            s = lax.dot_general(qh, kh, (((1,), (1,)), ((), ())),
                                preferred_element_type=F32) + bias_full   # (S, S) f32
            m = jnp.max(s, axis=-1, keepdims=True)
            e = jnp.exp(s - m)
            p = e * pl.reciprocal(jnp.sum(e, axis=-1, keepdims=True), approx=True)
            ctx_scr[:, sl] = jnp.dot(p.astype(BF16), vh,
                                     preferred_element_type=F32).astype(BF16)

        # Single full-width output projection + residual + LayerNorm.
        attn_out = jnp.dot(ctx_scr[...], wo_ref[0],
                           preferred_element_type=F32) + bo_ref[0]
        h1 = _layer_norm(h + attn_out, ln1g_ref[0], ln1b_ref[0], ln_eps)

        # Feed-forward block.
        inter = _gelu(jnp.dot(h1.astype(BF16), w1_ref[0],
                              preferred_element_type=F32) + b1_ref[0])
        ffn = jnp.dot(inter.astype(BF16), w2_ref[0],
                      preferred_element_type=F32) + b2_ref[0]
        h2 = _layer_norm(h1 + ffn, ln2g_ref[0], ln2b_ref[0], ln_eps)
        h_scr[b] = h2

        # Last layer: masked mean pool while the final hidden state is still in VMEM.
        @pl.when(layer == last_layer)
        def _(b=b, h2=h2, mrow=mrow):
            ssum = jnp.dot(mrow, h2, preferred_element_type=F32)       # (1, D)
            denom = jnp.maximum(jnp.sum(mrow, axis=-1, keepdims=True), 1e-9)
            pooled_ref[b] = ssum / denom


def bert_encoder_pooled(emb, mask3, params, *, num_heads, ln_eps=1e-12):
    """Runs the whole encoder stack + masked mean pool in a single pallas_call.

    Grid = (num_chunks, L): weights stream once per layer per chunk (<= 2x total),
    the hidden state is a persistent VMEM scratch, and only the (B, 1, D) pooled
    representation is written back to HBM.
    """
    B, S, D = emb.shape
    enc = params["enc"]
    L = enc["wqkv"].shape[0]
    head_dim = D // num_heads
    num_chunks = 2 if (B % 2 == 0 and B >= 2) else 1   # keep a parallel axis for v7x megacore
    Bc = B // num_chunks

    def w_spec(arr):
        return pl.BlockSpec((1,) + arr.shape[1:], lambda c, l: (l, 0, 0))  # per-layer stream

    in_specs = [
        pl.BlockSpec((Bc, S, D), lambda c, l: (c, 0, 0)),   # embeddings (consumed at l==0)
        pl.BlockSpec((Bc, 1, S), lambda c, l: (c, 0, 0)),   # attention mask (0/1)
        pl.BlockSpec((1, D), lambda c, l: (0, 0)),          # embedding LN gamma
        pl.BlockSpec((1, D), lambda c, l: (0, 0)),          # embedding LN beta
        w_spec(enc["wqkv"]), w_spec(enc["bqkv"]),
        w_spec(enc["wo"]), w_spec(enc["bo"]),
        w_spec(enc["ln1_g"]), w_spec(enc["ln1_b"]),
        w_spec(enc["w1"]), w_spec(enc["b1"]),
        w_spec(enc["w2"]), w_spec(enc["b2"]),
        w_spec(enc["ln2_g"]), w_spec(enc["ln2_b"]),
    ]
    kernel = functools.partial(_encoder_kernel, num_heads=num_heads,
                               head_dim=head_dim, ln_eps=ln_eps)
    return pl.pallas_call(
        kernel,
        out_shape=jax.ShapeDtypeStruct((B, 1, D), F32),
        grid=(num_chunks, L),
        in_specs=in_specs,
        out_specs=pl.BlockSpec((Bc, 1, D), lambda c, l: (c, 0, 0)),  # resident across l
        scratch_shapes=[pltpu.VMEM((Bc, S, D), F32),    # resident hidden state
                        pltpu.VMEM((S, D), BF16)],      # per-sequence attention context
        compiler_params=pltpu.CompilerParams(
            dimension_semantics=("parallel", "arbitrary"),
            # TODO(synk): at BERT-base shapes raise toward ~96-100 MiB on v5e/v6e;
            # on v7x (64 MiB) tile w1/w2 along d_ff instead.
            vmem_limit_bytes=64 * 1024 * 1024),
    )(emb, mask3, params["emb_ln_g"], params["emb_ln_b"],
      enc["wqkv"], enc["bqkv"], enc["wo"], enc["bo"],
      enc["ln1_g"], enc["ln1_b"], enc["w1"], enc["b1"],
      enc["w2"], enc["b2"], enc["ln2_g"], enc["ln2_b"])


# ----------------------------- classifier head MLP ---------------------------------

def _head_kernel(p_ref, wd_ref, bd_ref, lg_ref, lb_ref, wc_ref, bc_ref, o_ref):
    x = p_ref[...]                                               # (B, D)
    x = jnp.dot(x.astype(BF16), wd_ref[...],
                preferred_element_type=F32) + bd_ref[...]
    x = _gelu(x)
    x = _layer_norm(x, lg_ref[...], lb_ref[...], 1e-5)           # torch LN default eps
    # TODO(synk): nn.Dropout(p=0.1) is identity at inference; stochastic dropout omitted.
    o_ref[...] = jnp.dot(x.astype(BF16), wc_ref[...],
                         preferred_element_type=F32) + bc_ref[...]


def classifier_head(pooled, head):
    B = pooled.shape[0]
    return pl.pallas_call(
        _head_kernel,
        out_shape=jax.ShapeDtypeStruct((B, 1), F32),
        in_specs=[VMEM_SPEC] * 7,
        out_specs=VMEM_SPEC,
    )(pooled, head["wd"], head["bd"], head["ln_g"], head["ln_b"],
      head["wc"], head["bc"])


# ----------------------------- glue: embeddings + full forward ---------------------

def bert_embeddings(token_ids, params):
    # Gather-based embedding lookup stays in plain JAX (no clean rectangular BlockSpec);
    # the embedding LayerNorm is fused into the encoder's layer-0 branch.
    B, S = token_ids.shape
    return (params["word_emb"][token_ids]
            + params["pos_emb"][:S][None, :, :]
            + params["type_emb"][0][None, None, :])


def bert_classifier_forward(token_ids, attn_mask, params):
    attn_mask = attn_mask.astype(F32)
    B, S = token_ids.shape

    emb = bert_embeddings(token_ids, params)                     # (B, S, D) f32, pre-LN
    mask3 = attn_mask.reshape(B, 1, S)
    pooled = bert_encoder_pooled(emb, mask3, params,
                                 num_heads=params["num_heads"])  # (B, 1, D)
    return classifier_head(pooled.reshape(B, -1), params["head"])  # (B, 1)


# ----------------------------- deterministic parameter init ------------------------

def init_params(key, *, vocab_size, max_pos, type_vocab, d_model, num_heads,
                num_layers, d_ff):
    ks = jax.random.split(key, 9)
    nrm = lambda k, shape: 0.02 * jax.random.normal(k, shape, dtype=F32)
    zeros = lambda shape: jnp.zeros(shape, F32)
    ones = lambda shape: jnp.ones(shape, F32)
    L, D, Ff = num_layers, d_model, d_ff
    head_dim = D // num_heads
    scale = 1.0 / math.sqrt(head_dim)

    # Fold the attention 1/sqrt(head_dim) scale into the Q projection at prep time.
    wqkv = nrm(ks[3], (L, D, 3 * D))
    wqkv = wqkv.at[:, :, :D].multiply(scale)
    bqkv = zeros((L, 1, 3 * D))
    bqkv = bqkv.at[:, :, :D].multiply(scale)

    return {
        "num_heads": num_heads,
        "word_emb": nrm(ks[0], (vocab_size, D)),
        "pos_emb": nrm(ks[1], (max_pos, D)),
        "type_emb": nrm(ks[2], (type_vocab, D)),
        "emb_ln_g": ones((1, D)),
        "emb_ln_b": zeros((1, D)),
        "enc": {
            # weights bf16 (MXU + halved DMA bytes), biases / LN params f32
            "wqkv": wqkv.astype(BF16),
            "bqkv": bqkv,
            "wo":   nrm(ks[4], (L, D, D)).astype(BF16),
            "bo":   zeros((L, 1, D)),
            "ln1_g": jnp.ones((L, 1, D), F32), "ln1_b": zeros((L, 1, D)),
            "w1":   nrm(ks[5], (L, D, Ff)).astype(BF16),
            "b1":   zeros((L, 1, Ff)),
            "w2":   nrm(ks[6], (L, Ff, D)).astype(BF16),
            "b2":   zeros((L, 1, D)),
            "ln2_g": jnp.ones((L, 1, D), F32), "ln2_b": zeros((L, 1, D)),
        },
        "head": {
            "wd": nrm(ks[7], (D, D)).astype(BF16), "bd": zeros((1, D)),
            "ln_g": ones((1, D)), "ln_b": zeros((1, D)),
            "wc": nrm(ks[8], (D, 1)).astype(BF16), "bc": zeros((1, 1)),
        },
    }


# ----------------------------- demo ------------------------------------------------

if __name__ == "__main__":
    B, S = 2, 8
    D, H, L, Ff = 32, 2, 2, 64
    VOCAB, MAX_POS, TYPE_VOCAB = 50, 16, 2

    key = jax.random.PRNGKey(0)
    k_tok, k_par = jax.random.split(key)

    params = init_params(k_par, vocab_size=VOCAB, max_pos=MAX_POS, type_vocab=TYPE_VOCAB,
                         d_model=D, num_heads=H, num_layers=L, d_ff=Ff)

    token_ids = jax.random.randint(k_tok, (B, S), 0, VOCAB, dtype=jnp.int32)
    attn_mask = jnp.array([[1, 1, 1, 1, 1, 1, 0, 0],
                           [1, 1, 1, 1, 0, 0, 0, 0]], dtype=jnp.float32)

    logits = bert_classifier_forward(token_ids, attn_mask, params)
    jax.block_until_ready(logits)
    assert logits.shape == (B, 1) and logits.dtype == jnp.float32
    print("KERNEL_OK")
</pallas_src>

<mosaic_0001>
module attributes {stable_mosaic.version = 11 : i64} {
  func.func @_encoder_kernel(%arg0: i32, %arg1: i32, %arg2: memref<1x8x32xf32, #tpu.memory_space<vmem>>, %arg3: memref<1x1x8xf32, #tpu.memory_space<vmem>>, %arg4: memref<1x32xf32, #tpu.memory_space<vmem>>, %arg5: memref<1x32xf32, #tpu.memory_space<vmem>>, %arg6: memref<1x32x96xbf16, #tpu.memory_space<vmem>>, %arg7: memref<1x1x96xf32, #tpu.memory_space<vmem>>, %arg8: memref<1x32x32xbf16, #tpu.memory_space<vmem>>, %arg9: memref<1x1x32xf32, #tpu.memory_space<vmem>>, %arg10: memref<1x1x32xf32, #tpu.memory_space<vmem>>, %arg11: memref<1x1x32xf32, #tpu.memory_space<vmem>>, %arg12: memref<1x32x64xbf16, #tpu.memory_space<vmem>>, %arg13: memref<1x1x64xf32, #tpu.memory_space<vmem>>, %arg14: memref<1x64x32xbf16, #tpu.memory_space<vmem>>, %arg15: memref<1x1x32xf32, #tpu.memory_space<vmem>>, %arg16: memref<1x1x32xf32, #tpu.memory_space<vmem>>, %arg17: memref<1x1x32xf32, #tpu.memory_space<vmem>>, %arg18: memref<1x1x32xf32, #tpu.memory_space<vmem>>, %arg19: memref<1x8x32xf32, #tpu.memory_space<vmem>>, %arg20: memref<8x32xbf16, #tpu.memory_space<vmem>>) attributes {dimension_semantics = [#tpu.dimension_semantics<parallel>, #tpu.dimension_semantics<arbitrary>], iteration_bounds = array<i64: 2, 2>, scalar_prefetch = 0 : i64, scratch_operands = 2 : i64, tpu.core_type = #tpu.core_type<tc>, window_params = [{transform_indices = @transform_0, window_bounds = array<i64: 1, 8, 32>}, {transform_indices = @transform_1, window_bounds = array<i64: 1, 1, 8>}, {pipeline_mode = #tpu.pipeline_mode<synchronous>, transform_indices = @transform_2, window_bounds = array<i64: 1, 32>}, {pipeline_mode = #tpu.pipeline_mode<synchronous>, transform_indices = @transform_3, window_bounds = array<i64: 1, 32>}, {transform_indices = @transform_4, window_bounds = array<i64: 1, 32, 96>}, {transform_indices = @transform_5, window_bounds = array<i64: 1, 1, 96>}, {transform_indices = @transform_6, window_bounds = array<i64: 1, 32, 32>}, {transform_indices = @transform_7, window_bounds = array<i64: 1, 1, 32>}, {transform_indices = @transform_8, window_bounds = array<i64: 1, 1, 32>}, {transform_indices = @transform_9, window_bounds = array<i64: 1, 1, 32>}, {transform_indices = @transform_10, window_bounds = array<i64: 1, 32, 64>}, {transform_indices = @transform_11, window_bounds = array<i64: 1, 1, 64>}, {transform_indices = @transform_12, window_bounds = array<i64: 1, 64, 32>}, {transform_indices = @transform_13, window_bounds = array<i64: 1, 1, 32>}, {transform_indices = @transform_14, window_bounds = array<i64: 1, 1, 32>}, {transform_indices = @transform_15, window_bounds = array<i64: 1, 1, 32>}, {transform_indices = @transform_16, window_bounds = array<i64: 1, 1, 32>}]} {
    %c0_i32 = arith.constant 0 : i32
    %0 = arith.cmpi eq, %arg1, %c0_i32 : i32
    %1 = arith.extui %0 : i1 to i32
    %c0_i32_0 = arith.constant 0 : i32
    %2 = arith.cmpi ne, %1, %c0_i32_0 : i32
    scf.if %2 {
      %c0_78 = arith.constant 0 : index
      %c0_79 = arith.constant 0 : index
      %c0_80 = arith.constant 0 : index
      %165 = vector.load %arg2[%c0_78, %c0_79, %c0_80] : memref<1x8x32xf32, #tpu.memory_space<vmem>>, vector<1x8x32xf32>
      %c0_81 = arith.constant 0 : index
      %c0_82 = arith.constant 0 : index
      %166 = vector.load %arg4[%c0_81, %c0_82] : memref<1x32xf32, #tpu.memory_space<vmem>>, vector<1x32xf32>
      %c0_83 = arith.constant 0 : index
      %c0_84 = arith.constant 0 : index
      %167 = vector.load %arg5[%c0_83, %c0_84] : memref<1x32xf32, #tpu.memory_space<vmem>>, vector<1x32xf32>
      %cst_85 = arith.constant dense<0.000000e+00> : vector<1x8xf32>
      %168 = vector.multi_reduction <add>, %165, %cst_85 [2] : vector<1x8x32xf32> to vector<1x8xf32>
      %169 = vector.shape_cast %168 : vector<1x8xf32> to vector<1x8x1xf32>
      %cst_86 = arith.constant 3.200000e+01 : f32
      %170 = vector.broadcast %cst_86 : f32 to vector<1x8x1xf32>
      %171 = arith.divf %169, %170 : vector<1x8x1xf32>
      %172 = vector.broadcast %171 : vector<1x8x1xf32> to vector<1x8x32xf32>
      %173 = arith.subf %165, %172 : vector<1x8x32xf32>
      %174 = arith.mulf %173, %173 : vector<1x8x32xf32>
      %cst_87 = arith.constant dense<0.000000e+00> : vector<1x8xf32>
      %175 = vector.multi_reduction <add>, %174, %cst_87 [2] : vector<1x8x32xf32> to vector<1x8xf32>
      %176 = vector.shape_cast %175 : vector<1x8xf32> to vector<1x8x1xf32>
      %cst_88 = arith.constant 3.200000e+01 : f32
      %177 = vector.broadcast %cst_88 : f32 to vector<1x8x1xf32>
      %178 = arith.divf %176, %177 : vector<1x8x1xf32>
      %179 = vector.broadcast %171 : vector<1x8x1xf32> to vector<1x8x32xf32>
      %180 = arith.subf %165, %179 : vector<1x8x32xf32>
      %cst_89 = arith.constant 9.99999996E-13 : f32
      %181 = vector.broadcast %cst_89 : f32 to vector<1x8x1xf32>
      %182 = arith.addf %178, %181 : vector<1x8x1xf32>
      %183 = math.rsqrt %182 : vector<1x8x1xf32>
      %184 = vector.broadcast %183 : vector<1x8x1xf32> to vector<1x8x32xf32>
      %185 = arith.mulf %180, %184 : vector<1x8x32xf32>
      %186 = vector.shape_cast %166 : vector<1x32xf32> to vector<1x1x32xf32>
      %187 = vector.broadcast %186 : vector<1x1x32xf32> to vector<1x8x32xf32>
      %188 = arith.mulf %185, %187 : vector<1x8x32xf32>
      %189 = vector.shape_cast %167 : vector<1x32xf32> to vector<1x1x32xf32>
      %190 = vector.broadcast %189 : vector<1x1x32xf32> to vector<1x8x32xf32>
      %191 = arith.addf %188, %190 : vector<1x8x32xf32>
      %c0_90 = arith.constant 0 : index
      %c0_91 = arith.constant 0 : index
      %c0_92 = arith.constant 0 : index
      %192 = vector.load %arg19[%c0_90, %c0_91, %c0_92] : memref<1x8x32xf32, #tpu.memory_space<vmem>>, vector<1x8x32xf32>
      tpu.vector_store %arg19[%c0_90, %c0_91, %c0_92], %191 {strides = array<i32>} : memref<1x8x32xf32, #tpu.memory_space<vmem>>, vector<1x8x32xf32>,
    } else {
    }
    %c0 = arith.constant 0 : index
    %c0_1 = arith.constant 0 : index
    %c0_2 = arith.constant 0 : index
    %3 = vector.load %arg19[%c0, %c0_1, %c0_2] : memref<1x8x32xf32, #tpu.memory_space<vmem>>, vector<1x8x32xf32>
    %4 = vector.shape_cast %3 : vector<1x8x32xf32> to vector<8x32xf32>
    %c0_3 = arith.constant 0 : index
    %c0_4 = arith.constant 0 : index
    %c0_5 = arith.constant 0 : index
    %5 = vector.load %arg3[%c0_3, %c0_4, %c0_5] : memref<1x1x8xf32, #tpu.memory_space<vmem>>, vector<1x1x8xf32>
    %6 = vector.shape_cast %5 : vector<1x1x8xf32> to vector<1x8xf32>
    %cst = arith.constant 1.000000e+00 : f32
    %7 = vector.broadcast %cst : f32 to vector<1x8xf32>
    %8 = arith.subf %7, %6 : vector<1x8xf32>
    %cst_6 = arith.constant -1.000000e+09 : f32
    %9 = vector.broadcast %cst_6 : f32 to vector<1x8xf32>
    %10 = arith.mulf %8, %9 : vector<1x8xf32>
    %11 = vector.shape_cast %10 : vector<1x8xf32> to vector<1x8xf32>
    %12 = vector.broadcast %11 : vector<1x8xf32> to vector<8x8xf32>
    %13 = arith.truncf %4 : vector<8x32xf32> to vector<8x32xbf16>
    %c0_7 = arith.constant 0 : index
    %c0_8 = arith.constant 0 : index
    %c0_9 = arith.constant 0 : index
    %14 = vector.load %arg6[%c0_7, %c0_8, %c0_9] : memref<1x32x96xbf16, #tpu.memory_space<vmem>>, vector<1x32x96xbf16>
    %15 = vector.shape_cast %14 : vector<1x32x96xbf16> to vector<32x96xbf16>
    %cst_10 = arith.constant dense<0.000000e+00> : vector<8x96xf32>
    %16 = tpu.matmul %13, %15, %cst_10 {dimension_numbers = #tpu.dot_dimension_numbers<[1], [0], [0], [1], [0, 0, 1, 1], [], []>} : vector<8x32xbf16>, vector<32x96xbf16>, vector<8x96xf32> -> vector<8x96xf32>
    %c0_11 = arith.constant 0 : index
    %c0_12 = arith.constant 0 : index
    %c0_13 = arith.constant 0 : index
    %17 = vector.load %arg7[%c0_11, %c0_12, %c0_13] : memref<1x1x96xf32, #tpu.memory_space<vmem>>, vector<1x1x96xf32>
    %18 = vector.shape_cast %17 : vector<1x1x96xf32> to vector<1x96xf32>
    %19 = vector.broadcast %18 : vector<1x96xf32> to vector<8x96xf32>
    %20 = arith.addf %16, %19 : vector<8x96xf32>
    %21 = vector.extract_strided_slice %20 {offsets = [0, 0], sizes = [8, 32], strides = [1, 1]} : vector<8x96xf32> to vector<8x32xf32>
    %22 = vector.extract_strided_slice %20 {offsets = [0, 32], sizes = [8, 32], strides = [1, 1]} : vector<8x96xf32> to vector<8x32xf32>
    %23 = vector.extract_strided_slice %20 {offsets = [0, 64], sizes = [8, 32], strides = [1, 1]} : vector<8x96xf32> to vector<8x32xf32>
    %24 = vector.extract_strided_slice %21 {offsets = [0, 0], sizes = [8, 16], strides = [1, 1]} : vector<8x32xf32> to vector<8x16xf32>
    %25 = arith.truncf %24 : vector<8x16xf32> to vector<8x16xbf16>
    %26 = vector.extract_strided_slice %22 {offsets = [0, 0], sizes = [8, 16], strides = [1, 1]} : vector<8x32xf32> to vector<8x16xf32>
    %27 = arith.truncf %26 : vector<8x16xf32> to vector<8x16xbf16>
    %28 = vector.extract_strided_slice %23 {offsets = [0, 0], sizes = [8, 16], strides = [1, 1]} : vector<8x32xf32> to vector<8x16xf32>
    %29 = arith.truncf %28 : vector<8x16xf32> to vector<8x16xbf16>
    %cst_14 = arith.constant dense<0.000000e+00> : vector<8x8xf32>
    %30 = tpu.matmul %25, %27, %cst_14 {dimension_numbers = #tpu.dot_dimension_numbers<[1], [1], [0], [0], [0, 0, 1, 0], [], []>} : vector<8x16xbf16>, vector<8x16xbf16>, vector<8x8xf32> -> vector<8x8xf32>
    %31 = arith.addf %30, %12 : vector<8x8xf32>
    %cst_15 = arith.constant dense<0xFF800000> : vector<8xf32>
    %32 = vector.multi_reduction <maximumf>, %31, %cst_15 [1] : vector<8x8xf32> to vector<8xf32>
    %33 = vector.shape_cast %32 : vector<8xf32> to vector<8x1xf32>
    %34 = vector.broadcast %33 : vector<8x1xf32> to vector<8x8xf32>
    %35 = arith.subf %31, %34 : vector<8x8xf32>
    %36 = math.exp %35 : vector<8x8xf32>
    %cst_16 = arith.constant dense<0.000000e+00> : vector<8xf32>
    %37 = vector.multi_reduction <add>, %36, %cst_16 [1] : vector<8x8xf32> to vector<8xf32>
    %38 = vector.shape_cast %37 : vector<8xf32> to vector<8x1xf32>
    %39 = tpu.reciprocal %38 {approx = true} : vector<8x1xf32> -> vector<8x1xf32>
    %40 = vector.broadcast %39 : vector<8x1xf32> to vector<8x8xf32>
    %41 = arith.mulf %36, %40 : vector<8x8xf32>
    %42 = arith.truncf %41 : vector<8x8xf32> to vector<8x8xbf16>
    %cst_17 = arith.constant dense<0.000000e+00> : vector<8x16xf32>
    %43 = tpu.matmul %42, %29, %cst_17 {dimension_numbers = #tpu.dot_dimension_numbers<[1], [0], [0], [1], [0, 0, 1, 1], [], []>} : vector<8x8xbf16>, vector<8x16xbf16>, vector<8x16xf32> -> vector<8x16xf32>
    %44 = arith.truncf %43 : vector<8x16xf32> to vector<8x16xbf16>
    %c0_18 = arith.constant 0 : index
    %c0_19 = arith.constant 0 : index
    %45 = vector.load %arg20[%c0_18, %c0_19] : memref<8x32xbf16, #tpu.memory_space<vmem>>, vector<8x16xbf16>
    tpu.vector_store %arg20[%c0_18, %c0_19], %44 {strides = array<i32>} : memref<8x32xbf16, #tpu.memory_space<vmem>>, vector<8x16xbf16>,
    %46 = vector.extract_strided_slice %21 {offsets = [0, 16], sizes = [8, 16], strides = [1, 1]} : vector<8x32xf32> to vector<8x16xf32>
    %47 = arith.truncf %46 : vector<8x16xf32> to vector<8x16xbf16>
    %48 = vector.extract_strided_slice %22 {offsets = [0, 16], sizes = [8, 16], strides = [1, 1]} : vector<8x32xf32> to vector<8x16xf32>
    %49 = arith.truncf %48 : vector<8x16xf32> to vector<8x16xbf16>
    %50 = vector.extract_strided_slice %23 {offsets = [0, 16], sizes = [8, 16], strides = [1, 1]} : vector<8x32xf32> to vector<8x16xf32>
    %51 = arith.truncf %50 : vector<8x16xf32> to vector<8x16xbf16>
    %cst_20 = arith.constant dense<0.000000e+00> : vector<8x8xf32>
    %52 = tpu.matmul %47, %49, %cst_20 {dimension_numbers = #tpu.dot_dimension_numbers<[1], [1], [0], [0], [0, 0, 1, 0], [], []>} : vector<8x16xbf16>, vector<8x16xbf16>, vector<8x8xf32> -> vector<8x8xf32>
    %53 = arith.addf %52, %12 : vector<8x8xf32>
    %cst_21 = arith.constant dense<0xFF800000> : vector<8xf32>
    %54 = vector.multi_reduction <maximumf>, %53, %cst_21 [1] : vector<8x8xf32> to vector<8xf32>
    %55 = vector.shape_cast %54 : vector<8xf32> to vector<8x1xf32>
    %56 = vector.broadcast %55 : vector<8x1xf32> to vector<8x8xf32>
    %57 = arith.subf %53, %56 : vector<8x8xf32>
    %58 = math.exp %57 : vector<8x8xf32>
    %cst_22 = arith.constant dense<0.000000e+00> : vector<8xf32>
    %59 = vector.multi_reduction <add>, %58, %cst_22 [1] : vector<8x8xf32> to vector<8xf32>
    %60 = vector.shape_cast %59 : vector<8xf32> to vector<8x1xf32>
    %61 = tpu.reciprocal %60 {approx = true} : vector<8x1xf32> -> vector<8x1xf32>
    %62 = vector.broadcast %61 : vector<8x1xf32> to vector<8x8xf32>
    %63 = arith.mulf %58, %62 : vector<8x8xf32>
    %64 = arith.truncf %63 : vector<8x8xf32> to vector<8x8xbf16>
    %cst_23 = arith.constant dense<0.000000e+00> : vector<8x16xf32>
    %65 = tpu.matmul %64, %51, %cst_23 {dimension_numbers = #tpu.dot_dimension_numbers<[1], [0], [0], [1], [0, 0, 1, 1], [], []>} : vector<8x8xbf16>, vector<8x16xbf16>, vector<8x16xf32> -> vector<8x16xf32>
    %66 = arith.truncf %65 : vector<8x16xf32> to vector<8x16xbf16>
    %c0_24 = arith.constant 0 : index
    %c16 = arith.constant 16 : index
    %67 = vector.load %arg20[%c0_24, %c16] : memref<8x32xbf16, #tpu.memory_space<vmem>>, vector<8x16xbf16>
    tpu.vector_store %arg20[%c0_24, %c16], %66 {strides = array<i32>} : memref<8x32xbf16, #tpu.memory_space<vmem>>, vector<8x16xbf16>,
    %c0_25 = arith.constant 0 : index
    %c0_26 = arith.constant 0 : index
    %68 = vector.load %arg20[%c0_25, %c0_26] : memref<8x32xbf16, #tpu.memory_space<vmem>>, vector<8x32xbf16>
    %c0_27 = arith.constant 0 : index
    %c0_28 = arith.constant 0 : index
    %c0_29 = arith.constant 0 : index
    %69 = vector.load %arg8[%c0_27, %c0_28, %c0_29] : memref<1x32x32xbf16, #tpu.memory_space<vmem>>, vector<1x32x32xbf16>
    %70 = vector.shape_cast %69 : vector<1x32x32xbf16> to vector<32x32xbf16>
    %cst_30 = arith.constant dense<0.000000e+00> : vector<8x32xf32>
    %71 = tpu.matmul %68, %70, %cst_30 {dimension_numbers = #tpu.dot_dimension_numbers<[1], [0], [0], [1], [0, 0, 1, 1], [], []>} : vector<8x32xbf16>, vector<32x32xbf16>, vector<8x32xf32> -> vector<8x32xf32>
    %c0_31 = arith.constant 0 : index
    %c0_32 = arith.constant 0 : index
    %c0_33 = arith.constant 0 : index
    %72 = vector.load %arg9[%c0_31, %c0_32, %c0_33] : memref<1x1x32xf32, #tpu.memory_space<vmem>>, vector<1x1x32xf32>
    %73 = vector.shape_cast %72 : vector<1x1x32xf32> to vector<1x32xf32>
    %74 = vector.broadcast %73 : vector<1x32xf32> to vector<8x32xf32>
    %75 = arith.addf %71, %74 : vector<8x32xf32>
    %76 = arith.addf %4, %75 : vector<8x32xf32>
    %c0_34 = arith.constant 0 : index
    %c0_35 = arith.constant 0 : index
    %c0_36 = arith.constant 0 : index
    %77 = vector.load %arg10[%c0_34, %c0_35, %c0_36] : memref<1x1x32xf32, #tpu.memory_space<vmem>>, vector<1x1x32xf32>
    %78 = vector.shape_cast %77 : vector<1x1x32xf32> to vector<1x32xf32>
    %c0_37 = arith.constant 0 : index
    %c0_38 = arith.constant 0 : index
    %c0_39 = arith.constant 0 : index
    %79 = vector.load %arg11[%c0_37, %c0_38, %c0_39] : memref<1x1x32xf32, #tpu.memory_space<vmem>>, vector<1x1x32xf32>
    %80 = vector.shape_cast %79 : vector<1x1x32xf32> to vector<1x32xf32>
    %cst_40 = arith.constant dense<0.000000e+00> : vector<8xf32>
    %81 = vector.multi_reduction <add>, %76, %cst_40 [1] : vector<8x32xf32> to vector<8xf32>
    %82 = vector.shape_cast %81 : vector<8xf32> to vector<8x1xf32>
    %cst_41 = arith.constant 3.200000e+01 : f32
    %83 = vector.broadcast %cst_41 : f32 to vector<8x1xf32>
    %84 = arith.divf %82, %83 : vector<8x1xf32>
    %85 = vector.broadcast %84 : vector<8x1xf32> to vector<8x32xf32>
    %86 = arith.subf %76, %85 : vector<8x32xf32>
    %87 = arith.mulf %86, %86 : vector<8x32xf32>
    %cst_42 = arith.constant dense<0.000000e+00> : vector<8xf32>
    %88 = vector.multi_reduction <add>, %87, %cst_42 [1] : vector<8x32xf32> to vector<8xf32>
    %89 = vector.shape_cast %88 : vector<8xf32> to vector<8x1xf32>
    %cst_43 = arith.constant 3.200000e+01 : f32
    %90 = vector.broadcast %cst_43 : f32 to vector<8x1xf32>
    %91 = arith.divf %89, %90 : vector<8x1xf32>
    %92 = vector.broadcast %84 : vector<8x1xf32> to vector<8x32xf32>
    %93 = arith.subf %76, %92 : vector<8x32xf32>
    %cst_44 = arith.constant 9.99999996E-13 : f32
    %94 = vector.broadcast %cst_44 : f32 to vector<8x1xf32>
    %95 = arith.addf %91, %94 : vector<8x1xf32>
    %96 = math.rsqrt %95 : vector<8x1xf32>
    %97 = vector.broadcast %96 : vector<8x1xf32> to vector<8x32xf32>
    %98 = arith.mulf %93, %97 : vector<8x32xf32>
    %99 = vector.broadcast %78 : vector<1x32xf32> to vector<8x32xf32>
    %100 = arith.mulf %98, %99 : vector<8x32xf32>
    %101 = vector.broadcast %80 : vector<1x32xf32> to vector<8x32xf32>
    %102 = arith.addf %100, %101 : vector<8x32xf32>
    %103 = arith.truncf %102 : vector<8x32xf32> to vector<8x32xbf16>
    %c0_45 = arith.constant 0 : index
    %c0_46 = arith.constant 0 : index
    %c0_47 = arith.constant 0 : index
    %104 = vector.load %arg12[%c0_45, %c0_46, %c0_47] : memref<1x32x64xbf16, #tpu.memory_space<vmem>>, vector<1x32x64xbf16>
    %105 = vector.shape_cast %104 : vector<1x32x64xbf16> to vector<32x64xbf16>
    %cst_48 = arith.constant dense<0.000000e+00> : vector<8x64xf32>
    %106 = tpu.matmul %103, %105, %cst_48 {dimension_numbers = #tpu.dot_dimension_numbers<[1], [0], [0], [1], [0, 0, 1, 1], [], []>} : vector<8x32xbf16>, vector<32x64xbf16>, vector<8x64xf32> -> vector<8x64xf32>
    %c0_49 = arith.constant 0 : index
    %c0_50 = arith.constant 0 : index
    %c0_51 = arith.constant 0 : index
    %107 = vector.load %arg13[%c0_49, %c0_50, %c0_51] : memref<1x1x64xf32, #tpu.memory_space<vmem>>, vector<1x1x64xf32>
    %108 = vector.shape_cast %107 : vector<1x1x64xf32> to vector<1x64xf32>
    %109 = vector.broadcast %108 : vector<1x64xf32> to vector<8x64xf32>
    %110 = arith.addf %106, %109 : vector<8x64xf32>
    %111 = arith.mulf %110, %110 : vector<8x64xf32>
    %112 = arith.mulf %110, %111 : vector<8x64xf32>
    %cst_52 = arith.constant 4.471500e-02 : f32
    %113 = vector.broadcast %cst_52 : f32 to vector<8x64xf32>
    %114 = arith.mulf %113, %112 : vector<8x64xf32>
    %115 = arith.addf %110, %114 : vector<8x64xf32>
    %cst_53 = arith.constant 0.797884583 : f32
    %116 = vector.broadcast %cst_53 : f32 to vector<8x64xf32>
    %117 = arith.mulf %116, %115 : vector<8x64xf32>
    %118 = math.tanh %117 : vector<8x64xf32>
    %cst_54 = arith.constant 1.000000e+00 : f32
    %119 = vector.broadcast %cst_54 : f32 to vector<8x64xf32>
    %120 = arith.addf %119, %118 : vector<8x64xf32>
    %cst_55 = arith.constant 5.000000e-01 : f32
    %121 = vector.broadcast %cst_55 : f32 to vector<8x64xf32>
    %122 = arith.mulf %121, %120 : vector<8x64xf32>
    %123 = arith.mulf %110, %122 : vector<8x64xf32>
    %124 = arith.truncf %123 : vector<8x64xf32> to vector<8x64xbf16>
    %c0_56 = arith.constant 0 : index
    %c0_57 = arith.constant 0 : index
    %c0_58 = arith.constant 0 : index
    %125 = vector.load %arg14[%c0_56, %c0_57, %c0_58] : memref<1x64x32xbf16, #tpu.memory_space<vmem>>, vector<1x64x32xbf16>
    %126 = vector.shape_cast %125 : vector<1x64x32xbf16> to vector<64x32xbf16>
    %cst_59 = arith.constant dense<0.000000e+00> : vector<8x32xf32>
    %127 = tpu.matmul %124, %126, %cst_59 {dimension_numbers = #tpu.dot_dimension_numbers<[1], [0], [0], [1], [0, 0, 1, 1], [], []>} : vector<8x64xbf16>, vector<64x32xbf16>, vector<8x32xf32> -> vector<8x32xf32>
    %c0_60 = arith.constant 0 : index
    %c0_61 = arith.constant 0 : index
    %c0_62 = arith.constant 0 : index
    %128 = vector.load %arg15[%c0_60, %c0_61, %c0_62] : memref<1x1x32xf32, #tpu.memory_space<vmem>>, vector<1x1x32xf32>
    %129 = vector.shape_cast %128 : vector<1x1x32xf32> to vector<1x32xf32>
    %130 = vector.broadcast %129 : vector<1x32xf32> to vector<8x32xf32>
    %131 = arith.addf %127, %130 : vector<8x32xf32>
    %132 = arith.addf %102, %131 : vector<8x32xf32>
    %c0_63 = arith.constant 0 : index
    %c0_64 = arith.constant 0 : index
    %c0_65 = arith.constant 0 : index
    %133 = vector.load %arg16[%c0_63, %c0_64, %c0_65] : memref<1x1x32xf32, #tpu.memory_space<vmem>>, vector<1x1x32xf32>
    %134 = vector.shape_cast %133 : vector<1x1x32xf32> to vector<1x32xf32>
    %c0_66 = arith.constant 0 : index
    %c0_67 = arith.constant 0 : index
    %c0_68 = arith.constant 0 : index
    %135 = vector.load %arg17[%c0_66, %c0_67, %c0_68] : memref<1x1x32xf32, #tpu.memory_space<vmem>>, vector<1x1x32xf32>
    %136 = vector.shape_cast %135 : vector<1x1x32xf32> to vector<1x32xf32>
    %cst_69 = arith.constant dense<0.000000e+00> : vector<8xf32>
    %137 = vector.multi_reduction <add>, %132, %cst_69 [1] : vector<8x32xf32> to vector<8xf32>
    %138 = vector.shape_cast %137 : vector<8xf32> to vector<8x1xf32>
    %cst_70 = arith.constant 3.200000e+01 : f32
    %139 = vector.broadcast %cst_70 : f32 to vector<8x1xf32>
    %140 = arith.divf %138, %139 : vector<8x1xf32>
    %141 = vector.broadcast %140 : vector<8x1xf32> to vector<8x32xf32>
    %142 = arith.subf %132, %141 : vector<8x32xf32>
    %143 = arith.mulf %142, %142 : vector<8x32xf32>
    %cst_71 = arith.constant dense<0.000000e+00> : vector<8xf32>
    %144 = vector.multi_reduction <add>, %143, %cst_71 [1] : vector<8x32xf32> to vector<8xf32>
    %145 = vector.shape_cast %144 : vector<8xf32> to vector<8x1xf32>
    %cst_72 = arith.constant 3.200000e+01 : f32
    %146 = vector.broadcast %cst_72 : f32 to vector<8x1xf32>
    %147 = arith.divf %145, %146 : vector<8x1xf32>
    %148 = vector.broadcast %140 : vector<8x1xf32> to vector<8x32xf32>
    %149 = arith.subf %132, %148 : vector<8x32xf32>
    %cst_73 = arith.constant 9.99999996E-13 : f32
    %150 = vector.broadcast %cst_73 : f32 to vector<8x1xf32>
    %151 = arith.addf %147, %150 : vector<8x1xf32>
    %152 = math.rsqrt %151 : vector<8x1xf32>
    %153 = vector.broadcast %152 : vector<8x1xf32> to vector<8x32xf32>
    %154 = arith.mulf %149, %153 : vector<8x32xf32>
    %155 = vector.broadcast %134 : vector<1x32xf32> to vector<8x32xf32>
    %156 = arith.mulf %154, %155 : vector<8x32xf32>
    %157 = vector.broadcast %136 : vector<1x32xf32> to vector<8x32xf32>
    %158 = arith.addf %156, %157 : vector<8x32xf32>
    %c0_74 = arith.constant 0 : index
    %c0_75 = arith.constant 0 : index
    %c0_76 = arith.constant 0 : index
    %159 = vector.load %arg19[%c0_74, %c0_75, %c0_76] : memref<1x8x32xf32, #tpu.memory_space<vmem>>, vector<1x8x32xf32>
    %160 = vector.shape_cast %159 : vector<1x8x32xf32> to vector<8x32xf32>
    %161 = vector.shape_cast %158 : vector<8x32xf32> to vector<1x8x32xf32>
    tpu.vector_store %arg19[%c0_74, %c0_75, %c0_76], %161 {strides = array<i32>} : memref<1x8x32xf32, #tpu.memory_space<vmem>>, vector<1x8x32xf32>,
    %c1_i32 = arith.constant 1 : i32
    %162 = arith.cmpi eq, %arg1, %c1_i32 : i32
    %163 = arith.extui %162 : i1 to i32
    %c0_i32_77 = arith.constant 0 : i32
    %164 = arith.cmpi ne, %163, %c0_i32_77 : i32
    scf.if %164 {
      %cst_78 = arith.constant dense<0.000000e+00> : vector<1x32xf32>
      %165 = tpu.matmul %6, %158, %cst_78 {dimension_numbers = #tpu.dot_dimension_numbers<[1], [0], [0], [1], [0, 0, 1, 1], [], []>} : vector<1x8xf32>, vector<8x32xf32>, vector<1x32xf32> -> vector<1x32xf32>
      %cst_79 = arith.constant dense<0.000000e+00> : vector<1xf32>
      %166 = vector.multi_reduction <add>, %6, %cst_79 [1] : vector<1x8xf32> to vector<1xf32>
      %167 = vector.shape_cast %166 : vector<1xf32> to vector<1x1xf32>
      %cst_80 = arith.constant 9.99999971E-10 : f32
      %168 = vector.broadcast %cst_80 : f32 to vector<1x1xf32>
      %169 = arith.maximumf %167, %168 : vector<1x1xf32>
      %170 = vector.broadcast %169 : vector<1x1xf32> to vector<1x32xf32>
      %171 = arith.divf %165, %170 : vector<1x32xf32>
      %c0_81 = arith.constant 0 : index
      %c0_82 = arith.constant 0 : index
      %c0_83 = arith.constant 0 : index
      %172 = vector.load %arg18[%c0_81, %c0_82, %c0_83] : memref<1x1x32xf32, #tpu.memory_space<vmem>>, vector<1x1x32xf32>
      %173 = vector.shape_cast %172 : vector<1x1x32xf32> to vector<1x32xf32>
      %174 = vector.shape_cast %171 : vector<1x32xf32> to vector<1x1x32xf32>
      tpu.vector_store %arg18[%c0_81, %c0_82, %c0_83], %174 {strides = array<i32>} : memref<1x1x32xf32, #tpu.memory_space<vmem>>, vector<1x1x32xf32>,
    } else {
    }
    return
  }
  func.func @transform_0(%arg0: i32, %arg1: i32) -> (i32, i32, i32) {
    %c0_i32 = arith.constant 0 : i32
    %c0_i32_0 = arith.constant 0 : i32
    %c0_i32_1 = arith.constant 0 : i32
    return %arg0, %c0_i32, %c0_i32_0 : i32, i32, i32
  }
  func.func @transform_1(%arg0: i32, %arg1: i32) -> (i32, i32, i32) {
    %c0_i32 = arith.constant 0 : i32
    %c0_i32_0 = arith.constant 0 : i32
    %c0_i32_1 = arith.constant 0 : i32
    return %arg0, %c0_i32, %c0_i32_0 : i32, i32, i32
  }
  func.func @transform_2(%arg0: i32, %arg1: i32) -> (i32, i32) {
    %c0_i32 = arith.constant 0 : i32
    %c0_i32_0 = arith.constant 0 : i32
    %c0_i32_1 = arith.constant 0 : i32
    return %c0_i32, %c0_i32_0 : i32, i32
  }
  func.func @transform_3(%arg0: i32, %arg1: i32) -> (i32, i32) {
    %c0_i32 = arith.constant 0 : i32
    %c0_i32_0 = arith.constant 0 : i32
    %c0_i32_1 = arith.constant 0 : i32
    return %c0_i32, %c0_i32_0 : i32, i32
  }
  func.func @transform_4(%arg0: i32, %arg1: i32) -> (i32, i32, i32) {
    %c0_i32 = arith.constant 0 : i32
    %c0_i32_0 = arith.constant 0 : i32
    %c0_i32_1 = arith.constant 0 : i32
    return %arg1, %c0_i32, %c0_i32_0 : i32, i32, i32
  }
  func.func @transform_5(%arg0: i32, %arg1: i32) -> (i32, i32, i32) {
    %c0_i32 = arith.constant 0 : i32
    %c0_i32_0 = arith.constant 0 : i32
    %c0_i32_1 = arith.constant 0 : i32
    return %arg1, %c0_i32, %c0_i32_0 : i32, i32, i32
  }
  func.func @transform_6(%arg0: i32, %arg1: i32) -> (i32, i32, i32) {
    %c0_i32 = arith.constant 0 : i32
    %c0_i32_0 = arith.constant 0 : i32
    %c0_i32_1 = arith.constant 0 : i32
    return %arg1, %c0_i32, %c0_i32_0 : i32, i32, i32
  }
  func.func @transform_7(%arg0: i32, %arg1: i32) -> (i32, i32, i32) {
    %c0_i32 = arith.constant 0 : i32
    %c0_i32_0 = arith.constant 0 : i32
    %c0_i32_1 = arith.constant 0 : i32
    return %arg1, %c0_i32, %c0_i32_0 : i32, i32, i32
  }
  func.func @transform_8(%arg0: i32, %arg1: i32) -> (i32, i32, i32) {
    %c0_i32 = arith.constant 0 : i32
    %c0_i32_0 = arith.constant 0 : i32
    %c0_i32_1 = arith.constant 0 : i32
    return %arg1, %c0_i32, %c0_i32_0 : i32, i32, i32
  }
  func.func @transform_9(%arg0: i32, %arg1: i32) -> (i32, i32, i32) {
    %c0_i32 = arith.constant 0 : i32
    %c0_i32_0 = arith.constant 0 : i32
    %c0_i32_1 = arith.constant 0 : i32
    return %arg1, %c0_i32, %c0_i32_0 : i32, i32, i32
  }
  func.func @transform_10(%arg0: i32, %arg1: i32) -> (i32, i32, i32) {
    %c0_i32 = arith.constant 0 : i32
    %c0_i32_0 = arith.constant 0 : i32
    %c0_i32_1 = arith.constant 0 : i32
    return %arg1, %c0_i32, %c0_i32_0 : i32, i32, i32
  }
  func.func @transform_11(%arg0: i32, %arg1: i32) -> (i32, i32, i32) {
    %c0_i32 = arith.constant 0 : i32
    %c0_i32_0 = arith.constant 0 : i32
    %c0_i32_1 = arith.constant 0 : i32
    return %arg1, %c0_i32, %c0_i32_0 : i32, i32, i32
  }
  func.func @transform_12(%arg0: i32, %arg1: i32) -> (i32, i32, i32) {
    %c0_i32 = arith.constant 0 : i32
    %c0_i32_0 = arith.constant 0 : i32
    %c0_i32_1 = arith.constant 0 : i32
    return %arg1, %c0_i32, %c0_i32_0 : i32, i32, i32
  }
  func.func @transform_13(%arg0: i32, %arg1: i32) -> (i32, i32, i32) {
    %c0_i32 = arith.constant 0 : i32
    %c0_i32_0 = arith.constant 0 : i32
    %c0_i32_1 = arith.constant 0 : i32
    return %arg1, %c0_i32, %c0_i32_0 : i32, i32, i32
  }
  func.func @transform_14(%arg0: i32, %arg1: i32) -> (i32, i32, i32) {
    %c0_i32 = arith.constant 0 : i32
    %c0_i32_0 = arith.constant 0 : i32
    %c0_i32_1 = arith.constant 0 : i32
    return %arg1, %c0_i32, %c0_i32_0 : i32, i32, i32
  }
  func.func @transform_15(%arg0: i32, %arg1: i32) -> (i32, i32, i32) {
    %c0_i32 = arith.constant 0 : i32
    %c0_i32_0 = arith.constant 0 : i32
    %c0_i32_1 = arith.constant 0 : i32
    return %arg1, %c0_i32, %c0_i32_0 : i32, i32, i32
  }
  func.func @transform_16(%arg0: i32, %arg1: i32) -> (i32, i32, i32) {
    %c0_i32 = arith.constant 0 : i32
    %c0_i32_0 = arith.constant 0 : i32
    %c0_i32_1 = arith.constant 0 : i32
    return %arg0, %c0_i32, %c0_i32_0 : i32, i32, i32
  }
}

</mosaic_0001>

<bundles_post_ra>
// kernel: tpu_custom_call.1
= control target key start
LH: loop header
LB: loop body
LE: loop exit
PB: predicated region body
PF: predicated region fallthrough
CT: control target
= control target key end

     0   :  { %s2782_s0 = inlined_call_operand.hbm [shape: f32[2,8,32], index: 0, kind: input, shape index: {}]   ;;  %s2783_s1 = inlined_call_operand.hbm [shape: f32[2,1,8], index: 1, kind: input, shape index: {}]   ;;  %s2784_s2 = inlined_call_operand.hbm [shape: f32[1,32], index: 2, kind: input, shape index: {}]   ;;  %s2785_s3 = inlined_call_operand.hbm [shape: f32[1,32], index: 3, kind: input, shape index: {}]   ;;  %s2786_s4 = inlined_call_operand.vmem [shape: bf16[2,32,96], index: 4, kind: input, shape index: {}]   ;;  %s2787_s5 = inlined_call_operand.vmem [shape: f32[2,1,96], index: 5, kind: input, shape index: {}]   ;;  %s2788_s6 = inlined_call_operand.vmem [shape: bf16[2,32,32], index: 6, kind: input, shape index: {}]   ;;  %s2789_s7 = inlined_call_operand.vmem [shape: f32[2,1,32], index: 7, kind: input, shape index: {}]   ;;  %s2790_s8 = inlined_call_operand.vmem [shape: f32[2,1,32], index: 8, kind: input, shape index: {}]   ;;  %s2791_s9 = inlined_call_operand.vmem [shape: f32[2,1,32], index: 9, kind: input, shape index: {}]   ;;  %s2792_s10 = inlined_call_operand.vmem [shape: bf16[2,32,64], index: 10, kind: input, shape index: {}]   ;;  %s2793_s11 = inlined_call_operand.vmem [shape: f32[2,1,64], index: 11, kind: input, shape index: {}]   ;;  %s2794_s12 = inlined_call_operand.vmem [shape: bf16[2,64,32], index: 12, kind: input, shape index: {}]   ;;  %s2795_s13 = inlined_call_operand.vmem [shape: f32[2,1,32], index: 13, kind: input, shape index: {}]   ;;  %s2796_s14 = inlined_call_operand.vmem [shape: f32[2,1,32], index: 14, kind: input, shape index: {}]   ;;  %s2797_s15 = inlined_call_operand.vmem [shape: f32[2,1,32], index: 15, kind: input, shape index: {}]   ;;  %s2798_s16 = inlined_call_operand.hbm [shape: f32[2,1,32], index: 16, kind: output, shape index: {}]  }
   0x1   :  { %2813 = sst [smem:[#allocation30_spill]] %s2782_s0 }
   0x2   :  { %2814 = sst [smem:[#allocation31_spill]] %s2783_s1 }
   0x3   :  { %2815 = sst [smem:[#allocation32_spill]] %s2784_s2 }
   0x4   :  { %2816 = sst [smem:[#allocation33_spill]] %s2785_s3 }
   0x5   :  { %2817 = sst [smem:[#allocation34_spill]] %s2786_s4 }
   0x6   :  { %2818 = sst [smem:[#allocation35_spill]] %s2788_s6 }
   0x7   :  { %2819 = sst [smem:[#allocation36_spill]] %s2791_s9 }
   0x8   :  { %2820 = sst [smem:[#allocation37_spill]] %s2792_s10 }
   0x9   :  { %2821 = sst [smem:[#allocation38_spill]] %s2793_s11 }
   0xa   :  { %2822 = sst [smem:[#allocation39_spill]] %s2794_s12 }
   0xb   :  { %2823 = sst [smem:[#allocation40_spill]] %s2795_s13 }
   0xc   :  { %2824 = sst [smem:[#allocation41_spill]] %s2796_s14 }
   0xd   :  { %2825 = sst [smem:[#allocation42_spill]] %s2797_s15 }
   0xe   :  { %2826 = sst [smem:[#allocation43_spill]] %s2798_s16 }
   0xf   :  { %21 = vsyncpa [#allocation5], 0 }
  0x10   :  { %23 = vsyncpa [#allocation5 + $0x1], 0 }
  0x11   :  { %24 = vsyncpa [#allocation8], 0 }
  0x12   :  { %26 = vsyncpa [#allocation8 + $0x1], 0 }
  0x13   :  { %27 = vsyncpa [#allocation11], 0 }
  0x14   :  { %28 = vsyncpa [#allocation6], 0 }
  0x15   :  { %30 = vsyncpa [#allocation6 + $0x1], 0  ;;  %s2384_s21 = smov 0   ;;  %s2386_s22 = smov 0  }
  0x16   :  { %s2388_s23 = smov 0   ;;  %s2390_s24 = smov 0  }
  0x17   :  { %s2392_s25 = smov 0   ;;  %s2394_s26 = smov 0  }
  0x18   :  { %s2396_s27 = smov 0   ;;  %s2398_s28 = smov 0  }
  0x19 LB: > { %2827 = sst [smem:[#allocation18_spill]] %s2254_s21  ;;  %s2425_s29 = sadd.s32 4294967295, %s2282_s28   ;;  %s2282_s28 = sphi %s2398_s28, %s36_s28   ;;  %s2278_s27 = sphi %s2396_s27, %s2889_s27   ;;  %s2274_s26 = sphi %s2394_s26, %s2888_s26   ;;  %s2270_s25 = sphi %s2392_s25, %s2887_s25   ;;  %s2266_s24 = sphi %s2390_s24, %s2886_s24   ;;  %s2262_s23 = sphi %s2388_s23, %s2885_s23   ;;  %s2258_s22 = sphi %s2386_s22, %s2884_s22   ;;  %s2254_s21 = sphi %s2384_s21, %s2883_s21  }
  0x1a   : > { %2828 = sst [smem:[#allocation19_spill]] %s2258_s22  ;;  %s1775_s30 = sadd.s32 4294967294, %s2282_s28  }
  0x1b   : > { %2829 = sst [smem:[#allocation20_spill]] %s2262_s23  ;;  %p68_p0 = scmp.ne.s32.totalorder %s2258_s22, %s2254_s21 }
  0x1c   : > { %2830 = sst [smem:[#allocation21_spill]] %s2270_s25  ;;  %p2802_p1 = scmp.eq.s32.totalorder %s2425_s29, 0 }
  0x1d   : > { %2831 = sst [smem:[#allocation22_spill]] %s2274_s26  ;;  %p478_p3 = scmp.eq.s32.totalorder %s1775_s30, 3 }
  0x1e   : > { %2832 = sst [smem:[#allocation23_spill]] %s2278_s27  ;;  %p2434_p4 = por %p2802_p1, %p68_p0 }
  0x1f   : > { %2833 = sst [smem:[#allocation24_spill]] %s2282_s28  ;;  %p1776_p5 = scmp.ge.s32.totalorder %s2282_s28, 1 }
  0x20   : > { %s2834_s0 = scalar_select %p2434_p4, 1, 0 }
  0x21   : > { %p2439_p6 = por %p478_p3, %p68_p0  ;;  %p485_p7 = scmp.lt.s32.totalorder %s2282_s28, 5 }
  0x22   : > { %s2284_s19 = smov [#allocation9]   ;;  %s2285_s30 = smov [#allocation10]  }
  0x23   : > { %s2835_s17 = scalar_select %p2439_p6, 1, 0 }
  0x24   : > { %p2444_p8 = pnand %p1776_p5, %p485_p7  ;;  %s498_s20 = sshll.u32 %s2284_s19, 4  ;;  %s499_s20 = int_to_ptr.vmem [resolvable:$true] %s498_s20 }
  0x25   : > { %2836 = sst [smem:[#allocation25_spill]] %s2835_s17  ;;  %s509_s21 = sshll.u32 %s2285_s30, 4  ;;  %s510_s21 = int_to_ptr.vmem [resolvable:$true] %s509_s21 }
  0x26   : > { %p1938_p9 = pneg %p2444_p8  ;;  %s2077_s17 = scalar_lea.vmem %s499_s20, 16 }
  0x27   : > { %p2078_p12 = scmp.ne.s32.totalorder %s499_s20, %s2077_s17  ;;  %s2084_s19 = scalar_lea.vmem %s499_s20, 32 }
  0x28   : > { %p2452_p10 = pnand %p1938_p9, %p2802_p1  ;;  %p2085_p3 = scmp.lt.s32.totalorder %s499_s20, %s499_s20 }
  0x29   : > { %p2086_p5 = scmp.lt.s32.totalorder %s2084_s19, %s2077_s17 }
  0x2a   : > { %p2068_p11 = pneg %p2452_p10 }
  0x2b   : > { %p2087_p7 = por %p2086_p5, %p2085_p3 }
  0x2c   : > { %p2080_p13 = pnand %p2078_p12, %p2068_p11 }
  0x2e   : > { %p2081_p0 = pneg %p2080_p13 }
  0x30   : > { %p2088_p2 = pnand %p2087_p7, %p2081_p0 }
  0x32   : > { %2091 = shalt.err (!%p2088_p2)
}
  0x33   : > { %s2839_s2 = sld [smem:[#allocation32_spill]]  ;;  %s2103_s15 = scalar_lea.vmem %s510_s21, 16 }
  0x34   : > { %p2104_p9 = scmp.ne.s32.totalorder %s510_s21, %s2103_s15  ;;  %s2110_s14 = scalar_lea.vmem %s510_s21, 32 }
  0x35   : > { %p2111_p13 = scmp.lt.s32.totalorder %s510_s21, %s510_s21  ;;  %p2112_p6 = scmp.lt.s32.totalorder %s2110_s14, %s2103_s15 }
  0x36   : > { %p2106_p1 = pnand %p2104_p9, %p2068_p11 }
  0x37   : > { %p2113_p4 = por %p2112_p6, %p2111_p13 }
  0x38   : > { %p2107_p12 = pneg %p2106_p1 }
  0x39   : > { %1941 = dma.hbm_to_vmem [thread:$0]  (!%p2452_p10), %s2839_s2, 16, %s499_s20, [#allocation8]  }
  0x3a   : > { %p2114_p3 = pnand %p2113_p4, %p2107_p12 }
  0x3c   : > { %2117 = shalt.err (!%p2114_p3)
}
  0x3d   : > { %s2840_s3 = sld [smem:[#allocation33_spill]]  ;;  %s45_s14 = sadd.s32 1, %s2274_s26 }
  0x3e   : > { %s48_s15 = sadd.s32 1, %s2278_s27  ;;  %p46_p1 = scmp.ge.s32.totalorder %s45_s14, 2 }
  0x3f   : > { %s55_s16 = sadd.s32 1, %s2262_s23  ;;  %p62_p2 = scmp.ne.s32.totalorder %s2262_s23, %s2258_s22 }
  0x40   : > { %p63_p4 = scmp.eq.s32.totalorder %s2282_s28, 0  ;;  %s2891_s14 = smov (%p46_p1, %s45_s14), 0 }
  0x41   : > { %2841 = sst [smem:[#allocation26_spill]] %s2891_s14  ;;  %s2893_s15 = smov (!%p46_p1, %s48_s15), %s2278_s27 }
  0x42   : > { %p2483_p6 = por %p63_p4, %p62_p2  ;;  %p2843_p11 = scmp.eq.s32.totalorder %s2425_s29, 3 }
  0x43   : > { %1944 = dma.hbm_to_vmem [thread:$0]  (!%p2452_p10), %s2840_s3, 16, %s510_s21, [#allocation11]  }
  0x44   : > { %p2489_p0 = por %p2843_p11, %p62_p2  ;;  %p50_p10 = scmp.ge.s32.totalorder %s2893_s15, 2 }
  0x45   : > { %p1958_p5 = scmp.lt.s32.totalorder %s2282_s28, 4  ;;  %s2495_s21 = sand.u32 1, %s2262_s23  }
  0x46   : > { %s2844_s20 = scalar_select %p2489_p0, 1, 0 }
  0x47   : > { %s1781_s30 = sshll.u32 %s2278_s27, 7  ;;  %s2895_s15 = smov (%p50_p10, %s2893_s15), 0 }
  0x48   : > { %2845 = sst [smem:[#allocation27_spill]] %s2844_s20  ;;  %s1780_s17 = sshll.u32 %s2495_s21, 3 }
  0x49   : > { %2846 = sst [smem:[#allocation28_spill]] %s2895_s15  ;;  %s52_s19 = ssub.s32 %s2278_s27, %s2895_s15 }
  0x4a   : > { %p53_p7 = scmp.eq.s32.totalorder %s52_s19, 0  ;;  %s2847_s14 = sld [smem:[#allocation30_spill]] }
  0x4b   : > { %s524_s13 = scalar_lea.vmem [#allocation4], %s1780_s17  ;;  %p2508_p9 = pnand %p1958_p5, %p2483_p6 }
  0x4c   : > { %s531_s12 = sshll.u32 %s524_s13, 4  ;;  %s521_s10 = scalar_lea.sflag [#allocation5], %s2495_s21  ;;  %s532_s12 = int_to_ptr.vmem [resolvable:$true] %s531_s12 }
  0x4d   : > { %s2513_s11 = scalar_select %p53_p7, %s2262_s23, %s55_s16  }
  0x4e   : > { %p2120_p12 = pneg %p2508_p9  ;;  %s2131_s19 = scalar_lea.vmem %s532_s12, 128 }
  0x4f   : > { %2849 = sst [smem:[#allocation29_spill]] %s2513_s11  ;;  %p2132_p13 = scmp.ne.s32.totalorder %s532_s12, %s2131_s19 }
  0x50   : > { %s529_s26 = scalar_lea.hbm %s2847_s14, %s1781_s30  ;;  %s2286_s2 = smov [#allocation4]  }
  0x51   : > { %p2134_p3 = pnand %p2132_p13, %p2120_p12  ;;  %s2136_s3 = sshll.u32 %s2286_s2, 4  ;;  %s2137_s3 = int_to_ptr.vmem [resolvable:$false] %s2136_s3 }
  0x52   : > { %s2138_s13 = scalar_lea.vmem %s2137_s3, 256  ;;  %p2139_p2 = scmp.lt.s32.totalorder %s532_s12, %s2137_s3 }
  0x53   : > { %p2135_p1 = pneg %p2134_p3  ;;  %p2140_p4 = scmp.lt.s32.totalorder %s2138_s13, %s2131_s19 }
  0x55   : > { %p2141_p6 = por %p2140_p4, %p2139_p2 }
  0x57   : > { %p2142_p11 = pnand %p2141_p6, %p2135_p1 }
  0x59   : > { %2145 = shalt.err (!%p2142_p11)
}
  0x5a   : > { %1948 = dma.hbm_to_vmem [thread:$0]  (!%p2508_p9), %s529_s26, 128, %s532_s12, %s521_s10  }
  0x5b   : > { %s538_s14 = sand.u32 1, %s2282_s28   ;;  %s1782_s16 = sshll.u32 %s2278_s27, 4 }
  0x5c   : > { %s2850_s1 = sld [smem:[#allocation31_spill]]  ;;  %s541_s2 = scalar_lea.vmem [#allocation7], %s2495_s21 }
  0x5d   : > { %s548_s15 = sshll.u32 %s541_s2, 4  ;;  %s539_s19 = scalar_lea.sflag [#allocation8], %s538_s14  ;;  %s549_s15 = int_to_ptr.vmem [resolvable:$true] %s548_s15 }
  0x5e   : > { %s2159_s3 = scalar_lea.vmem %s549_s15, 16  ;;  %s2287_s13 = smov [#allocation7]  }
  0x5f   : > { %p2160_p10 = scmp.ne.s32.totalorder %s549_s15, %s2159_s3  ;;  %s2164_s11 = sshll.u32 %s2287_s13, 4  ;;  %s2165_s11 = int_to_ptr.vmem [resolvable:$false] %s2164_s11 }
  0x60   : > { %s2166_s10 = scalar_lea.vmem %s2165_s11, 32  ;;  %p2167_p13 = scmp.lt.s32.totalorder %s549_s15, %s2165_s11 }
  0x61   : > { %p2162_p5 = pnand %p2160_p10, %p2120_p12  ;;  %p2168_p3 = scmp.lt.s32.totalorder %s2166_s10, %s2159_s3 }
  0x62   : > { %s546_s17 = scalar_lea.hbm %s2850_s1, %s1782_s16 }
  0x63   : > { %p2163_p7 = pneg %p2162_p5  ;;  %p2169_p1 = por %p2168_p3, %p2167_p13 }
  0x65   : > { %p2170_p2 = pnand %p2169_p1, %p2163_p7 }
  0x67   : > { %2173 = shalt.err (!%p2170_p2)
}
  0x68   : > { %1951 = dma.hbm_to_vmem [thread:$0]  (!%p2508_p9), %s546_s17, 16, %s549_s15, %s539_s19  }
  0x69   : > { %637 = sbr.rel (%p2444_p8) target bundleno = 3073 (0xc01), region = 84  ;;  %s2537_s12 = sand.u32 (!%p2444_p8), 1, %s2258_s22  }
  0x6a   : > { %s1784_s26 = sshll.u32 (!%p2444_p8), %s2537_s12, 3  ;;  %s640_s21 = scalar_lea.sflag (!%p2444_p8), [#allocation5], %s2537_s12 }
  0x6b   : > { %s2541_s14 = scalar_lea.vmem (!%p2444_p8), [#allocation4], %s1784_s26  ;;  %p2851_p12 = scmp.ne.s32.totalorder (!%p2444_p8), %s2834_s0, 0 }
  0x6e   : > { %2233 = dma.done.wait (%p2851_p12), %s640_s21, 128  }
  0x6f   : > { %2235 = vsyncadd (%p2851_p12), %s640_s21, 4294967168  ;;  %s648_s11 = sand.u32 1, %s2425_s29  }
  0x70   : > { %s649_s18 = scalar_lea.sflag [#allocation8], %s648_s11 }
  0x71   : > { %2237 = dma.done.wait (%p2851_p12), %s649_s18, 16  }
  0x72   : > { %2239 = vsyncadd (%p2851_p12), %s649_s18, 4294967280  ;;  %p2852_p8 = scmp.eq.s32.totalorder %s2425_s29, 0 }
  0x74   : > { %2241 = dma.done.wait (%p2852_p8), [#allocation8], 16   ;;  %p2853_p9 = pmov %p2852_p8 }
  0x75   : > { %p2854_p4 = pmov %p2852_p8 }
  0x76   : > { %2243 = vsyncadd (%p2853_p9), [#allocation8], 4294967280 }
  0x77   : > { %2245 = dma.done.wait (%p2854_p4), [#allocation11], 16   ;;  %p2855_p6 = pmov %p2854_p4 }
  0x78   : > { %p755_p11 = scmp.lt.s32.totalorder %s2266_s24, 1  ;;  %s2856_s4 = sld [smem:[#allocation34_spill]] }
  0x79   : > { %2247 = vsyncadd (%p2855_p6), [#allocation11], 4294967280  ;;  %s2857_s6 = sld [smem:[#allocation35_spill]]  ;;  %s754_s19 = scalar_lea.vmem [#allocation12], %s2537_s12 }
  0x7a   : > { %s2563_s20 = scalar_select %p755_p11, %s2266_s24, 1 }
  0x7b   : > { %s2859_s1 = sld [smem:[#allocation37_spill]]  ;;  %p1795_p10 = scmp.ne.s32.totalorder %s2266_s24, 0 }
  0x7c   : > { %s1830_s0 = sshll.u32 %s2563_s20, 4  ;;  %s1833_s23 = sshll.u32 %s2563_s20, 5 }
  0x7d   : > { %s2861_s21 = sld [smem:[#allocation39_spill]] }
  0x7e   : > { %s2573_s2 = scalar_lea.vmem %s2856_s4, %s1830_s0  ;;  %s2862_s15 = sld [smem:[#allocation40_spill]] }
  0x7f   : > { %s2578_s13 = scalar_lea.vmem %s2857_s6, %s1830_s0  ;;  %s2860_s6 = sld [smem:[#allocation38_spill]] }
  0x80   : > { %s2863_s28 = sld [smem:[#allocation41_spill]] }
  0x81   : > { %s2595_s4 = scalar_lea.vmem %s2859_s1, %s1830_s0  ;;  %s2864_s17 = sld [smem:[#allocation42_spill]] }
  0x83   : > { %s2605_s22 = scalar_lea.vmem %s2861_s21, %s1833_s23  ;;  %803 = sbr.rel (%p1795_p10) target bundleno = 446 (0x1be), region = 104 }
  0x84   : > { %s792_s16 = scalar_lea.vmem %s2862_s15, %s2563_s20 }
  0x85   : > { %s784_s27 = scalar_lea.vmem %s2860_s6, %s2563_s20 }
  0x86   : > { %s795_s30 = scalar_lea.vmem %s2863_s28, %s2563_s20 }
  0x87   : > { %s798_s9 = scalar_lea.vmem %s2864_s17, %s2563_s20 }
  0x88   : > { %v804_v0 = vld [vmem:[%s2541_s14] sm:$0xff]  ;;  %vm807_vm0 = vcmask 261120   ;;  %v1796_v11 = vld [vmem:[#allocation9] ss:$0 sm:$0xff]  ;;  %v1797_v13 = vld [vmem:[#allocation10] ss:$0 sm:$0xff] }
  0x89   : > { %v808_v1 = vsel %vm807_vm0, %v804_v0, 0.0 }
  0x8a   : > { %809 = vadd.xlane.f32.xlu0 %v808_v1 }
 0x113   : > { %v810_v2 = vpop.xlane.xlu0 %809 }
 0x114   : > { %v812_v3 = vmul.f32 0.03125, %v810_v2 }
 0x116   : > { %v813_v4 = vsub.f32 %v804_v0, %v812_v3 }
 0x118   : > { %v814_v5 = vmul.f32 %v813_v4, %v813_v4 }
 0x11a   : > { %v815_v6 = vsel %vm807_vm0, %v814_v5, 0.0 }
 0x11b   : > { %816 = vadd.xlane.f32.xlu0 %v815_v6 }
 0x1a4   : > { %v817_v7 = vpop.xlane.xlu0 %816 }
 0x1a5   : > { %v818_v8 = vmul.f32 0.03125, %v817_v7 }
 0x1a7   : > { %v819_v9 = vadd.f32 1e-12, %v818_v8 }
 0x1a9   : > { %2038 = vrsqrt.f32 %v819_v9 }
 0x1b6   : > { %v2039_v10 = vpop.eup %2038 }
 0x1b7   : > { %v821_v12 = vmul.f32 %v2039_v10, %v813_v4 }
 0x1b9   : > { %v828_v14 = vmul.f32 %v1796_v11, %v821_v12 }
 0x1bb   : > { %v835_v15 = vadd.f32 %v1797_v13, %v828_v14 }
 0x1bd   : > { %836 = vst.msk [vmem:[#allocation2] sm:$0xff] %vm807_vm0, %v835_v15 }
 0x1be PF: > { %v2040_v16 = vld [vmem:[%s2573_s2 + $0x8] sm:$0xff]   ;;  %v2288_v17 = vmov 0.0   ;;  %v2041_v18 = vld [vmem:[%s2573_s2] sm:$0xff]   ;;  %vm2289_vm1 = vmmov 0   ;;  %vm871_vm2 = vcmask 261120   ;;  %s2865_s28 = scalar_lea.vmem %s2787_s5, %s2563_s20  ;;  %s2290_s14 = smov 112   ;;  %v842_v33 = vlaneseq }
 0x1bf   : > { %1859 = vmatprep.subr.bf16.mxu0 %v2288_v17  ;;  %1867 = vmatprep.subr.bf16.mxu1 %v2288_v17  ;;  %v1798_v21 = vld [vmem:[%s2865_s28] ss:$0 sm:$0xff]  ;;  %s2291_s15 = smov 96   ;;  %s2292_s25 = smov 80   ;;  %vm919_vm3 = vcmask 130048   ;;  %vm966_vm4 = vcmask 64512  }
 0x1c0   : > { %1860 = vmatpush3.bf16.msra.mxu0 %v2040_v16  ;;  %1863 = vmatprep.mubr.msk.bf16.mxu0 %vm2289_vm1, %v2288_v17  ;;  %s2866_s2 = scalar_lea.vmem [#allocation7], %s2537_s12  ;;  %v843_v36 = vshrl.u32 %v842_v33, 7  ;;  %s2293_s21 = smov 64   ;;  %vm984_vm5 = vcmask 1043456   ;;  %v2042_v10 = vld [vmem:[%s2578_s13 + $0x8] sm:$0xff]   ;;  %vm1029_vm6 = vcmask 125952  }
 0x1c1   : > { %1861 = vmatprep.subr.bf16.mxu0 %v2288_v17  ;;  %1869 = vmatprep.mubr.msk.bf16.mxu1 %vm2289_vm1, %v2288_v17  ;;  %v2655_v34 = vld [vmem:[%s2866_s2] sm:$0x1]  ;;  %s2294_s3 = smov 48   ;;  %s2295_s10 = smov 16   ;;  %vm1148_vm7 = vcmask 257152   ;;  %vm1364_vm8 = vcmask 523264  }
 0x1c2   : > { %v839_v35 = vsub.f32 1.0, %v2655_v34  ;;  %v844_v38 = vsub.s32 0, %v843_v36  ;;  %v2043_v12 = vld [vmem:[%s2578_s13] sm:$0xff]   ;;  %s2867_s11 = scalar_lea.vmem %s2789_s7, %s2563_s20  ;;  %s2868_s1 = scalar_lea.vmem %s2790_s8, %s2563_s20 }
 0x1c3   : > { %p1825_p5 = scmp.ne.s32.totalorder %s2266_s24, 1 }
 0x1c4   : > { %v2631_v19 = vld [vmem:[#allocation2] sm:$0xff]  ;;  %1862 = vmatpush3.bf16.msra.mxu0 %v2041_v18  ;;  %v840_v37 = vmul.f32 -1e+09, %v839_v35 }
 0x1c5   : > { %v847_v20 = vpack.c.bf16 %v2631_v19, %v2631_v19  ;;  %1873 = vmatprep.subr.bf16.mxu0 %v2288_v17 }
 0x1c6   : > { %v845_v39 = vrot.slane %v840_v37, %v844_v38 }
 0x1c7   : > { %1864 = vmatmul.mubr.msk.bf16.vlgmr.msra.gmra.mxu0 %vm871_vm2, %v847_v20 }
 0x1c8   : > { %1875 = vmatprep.mubr.msk.bf16.mxu0 %vm2289_vm1, %v2288_v17 }
 0x287   : > { %v909_v22 = vpop.f32.mrf.mxu0 }
 0x288   : > { %v910_v23 = vadd.f32 %v1798_v21, %v909_v22 }
 0x289   : > { %v1865_v24 = vpop.f32.mrf.mxu0 }
 0x28a   : > { %v915_v25 = vpack.c.bf16 %v910_v23, %v910_v23 }
 0x28b   : > { %v912_v26 = vpop.f32.mrf.mxu0 }
 0x28c   : > { %1031 = vrot.lane.b32.xlu1 %v915_v25, %s2290_s14  ;;  %917 = vrot.lane.b32.xlu0 %v915_v25, %s2291_s15  ;;  %v1807_v26 = vld [vmem:[%s2867_s11] ss:$0 sm:$0xff] }
 0x28d   : > { %v1866_v27 = vpop.f32.mrf.mxu0 }
 0x290   : > { %1033 = vrot.lane.b32.xlu0 %v915_v25, %s2292_s25 }
 0x2fe   : > { %v918_v28 = vpop.permute.xlu0 %917  ;;  %v1032_v32 = vpop.permute.xlu1 %1031 }
 0x2ff   : > { %v924_v29 = vsel %vm919_vm3, %v918_v28, 0 }
 0x300   : > { %1868 = vmatpush3.bf16.xpose.msra.mxu1 %v924_v29 }
 0x301   : > { %1879 = vmatprep.subr.bf16.mxu1 %v2288_v17 }
 0x302   : > { %v1034_v30 = vpop.permute.xlu0 %1033 }
 0x303   : > { %v1039_v31 = vsel %vm919_vm3, %v1034_v30, 0 }
 0x307   : > { %1870 = vmatmul.mubr.msk.bf16.vlgmr.msra.gmra.mxu1 %vm919_vm3, %v915_v25 }
 0x308   : > { %1880 = vmatpush3.bf16.xpose.msra.mxu1 %v1039_v31  ;;  %1881 = vmatprep.mubr.msk.bf16.mxu1 %vm2289_vm1, %v2288_v17 }
 0x309   : > { %1891 = vmatprep.subr.bf16.mxu1 %v2288_v17 }
 0x30f   : > { %1882 = vmatmul.mubr.msk.bf16.vlgmr.msra.gmra.mxu1 %vm919_vm3, %v1032_v32 }
 0x310   : > { %1895 = vmatprep.mubr.msk.bf16.mxu1 %vm2289_vm1, %v2288_v17  ;;  %1892 = vmatpush3.bf16.msra.mxu1 %v2042_v10 }
 0x311   : > { %1893 = vmatprep.subr.bf16.mxu1 %v2288_v17 }
 0x314   : > { %1894 = vmatpush3.bf16.msra.mxu1 %v2043_v12 }
 0x315   : > { %1907 = vmatprep.subr.bf16.mxu1 %v2288_v17 }
 0x3c7   : > { %v960_v40 = vpop.f32.mrf.mxu1 }
 0x3c8   : > { %v961_v41 = vadd.f32 %v960_v40, %v845_v39  ;;  %v2044_v40 = vld [vmem:[%s2595_s4 + $0x8] sm:$0xff]  }
 0x3c9   : > { %v1871_v42 = vpop.f32.mrf.mxu1 }
 0x3ca   : > { %v967_v43 = vsel %vm966_vm4, %v961_v41, -inf }
 0x3cb   : > { %968 = vmax.xlane.f32.xlu1 %v967_v43  ;;  %v963_v44 = vpop.f32.mrf.mxu1 }
 0x3cd   : > { %v1872_v45 = vpop.f32.mrf.mxu1 }
 0x3ce   : > { %v1811_v45 = vld [vmem:[%s2868_s1] ss:$0 sm:$0xff] }
 0x3cf   : > { %v1075_v46 = vpop.f32.mrf.mxu1 }
 0x3d0   : > { %v1076_v47 = vadd.f32 %v1075_v46, %v845_v39 }
 0x3d1   : > { %v1883_v48 = vpop.f32.mrf.mxu1 }
 0x3d2   : > { %v1081_v49 = vsel %vm966_vm4, %v1076_v47, -inf }
 0x3d3   : > { %1082 = vmax.xlane.f32.xlu0 %v1081_v49  ;;  %v1078_v50 = vpop.f32.mrf.mxu1 }
 0x3d5   : > { %v1884_v51 = vpop.f32.mrf.mxu1 }
 0x3d6   : > { %v2046_v51 = vld [vmem:[%s2605_s22 + $0x18] sm:$0xff]  }
 0x454   : > { %v969_v52 = vpop.xlane.xlu1 %968 }
 0x455   : > { %v970_v53 = vsub.f32 %v961_v41, %v969_v52  ;;  %v2045_v41 = vld [vmem:[%s2595_s4] sm:$0xff]   ;;  %s2869_s4 = sld [smem:[#allocation36_spill]]  ;;  %v2047_v52 = vld [vmem:[%s2605_s22 + $0x10] sm:$0xff]  }
 0x457   : > { %v971_v54 = vmul.f32 1.442695, %v970_v53  ;;  %v2048_v53 = vld [vmem:[%s2605_s22 + $0x8] sm:$0xff]  }
 0x459   : > { %2050 = vpow2.f32 %v971_v54  ;;  %v2049_v54 = vld [vmem:[%s2605_s22] sm:$0xff]  }
 0x45b   : > { %s2870_s6 = scalar_lea.vmem %s2869_s4, %s2563_s20 }
 0x45c   : > { %v1083_v55 = vpop.xlane.xlu0 %1082 }
 0x45d   : > { %v1084_v56 = vsub.f32 %v1076_v47, %v1083_v55  ;;  %v1812_v47 = vld [vmem:[%s2870_s6] ss:$0 sm:$0xff] }
 0x45e   : > { %v1813_v55 = vld [vmem:[%s784_s27] ss:$0 sm:$0xff] }
 0x45f   : > { %v1085_v57 = vmul.f32 1.442695, %v1084_v56 }
 0x461   : > { %2052 = vpow2.f32 %v1085_v57 }
 0x466   : > { %v2051_v58 = vpop.eup %2050 }
 0x467   : > { %v973_v59 = vsel %vm966_vm4, %v2051_v58, 0.0 }
 0x468   : > { %974 = vadd.xlane.f32.xlu0 %v973_v59 }
 0x46e   : > { %v2053_v60 = vpop.eup %2052 }
 0x46f   : > { %v1087_v61 = vsel %vm966_vm4, %v2053_v60, 0.0 }
 0x470   : > { %1088 = vadd.xlane.f32.xlu1 %v1087_v61 }
 0x47e   : > { %979 = vrot.lane.b32.xlu0 %v915_v25, %s2293_s21 }
 0x481   : > { %1093 = vrot.lane.b32.xlu1 %v915_v25, %s2294_s3 }
 0x4f1   : > { %v975_v62 = vpop.xlane.xlu0 %974 }
 0x4f2   : > { %2054 = vrcp.f32 %v975_v62 }
 0x4f5   : > { %v980_v63 = vpop.permute.xlu0 %979 }
 0x4f6   : > { %v986_v0 = vsel %vm984_vm5, %v980_v63, 0 }
 0x4f7   : > { %1874 = vmatpush3.bf16.msra.mxu0 %v986_v0 }
 0x4f8   : > { %1885 = vmatprep.subr.bf16.mxu0 %v2288_v17 }
 0x4f9   : > { %v1089_v1 = vpop.xlane.xlu1 %1088 }
 0x4fa   : > { %2056 = vrcp.f32 %v1089_v1 }
 0x4fd   : > { %v1094_v4 = vpop.permute.xlu1 %1093 }
 0x4fe   : > { %v1099_v6 = vsel %vm984_vm5, %v1094_v4, 0 }
 0x4ff   : > { %v2055_v2 = vpop.eup %2054 }
 0x500   : > { %v977_v3 = vmul.f32 %v2055_v2, %v2051_v58 }
 0x502   : > { %v978_v5 = vpack.c.bf16 %v977_v3, %v977_v3 }
 0x504   : > { %1876 = vmatmul.mubr.msk.bf16.vlgmr.msra.gmra.mxu0 %vm966_vm4, %v978_v5 }
 0x505   : > { %1886 = vmatpush3.bf16.msra.mxu0 %v1099_v6  ;;  %1887 = vmatprep.mubr.msk.bf16.mxu0 %vm2289_vm1, %v2288_v17  ;;  %v1817_v6 = vld [vmem:[%s792_s16] ss:$0 sm:$0xff] }
 0x506   : > { %1899 = vmatprep.subr.bf16.mxu0 %v2288_v17 }
 0x507   : > { %v2057_v7 = vpop.eup %2056 }
 0x508   : > { %v1091_v8 = vmul.f32 %v2057_v7, %v2053_v60 }
 0x50a   : > { %v1092_v9 = vpack.c.bf16 %v1091_v8, %v1091_v8 }
 0x50c   : > { %1888 = vmatmul.mubr.msk.bf16.vlgmr.msra.gmra.mxu0 %vm966_vm4, %v1092_v9 }
 0x50d   : > { %1903 = vmatprep.mubr.msk.bf16.mxu0 %vm2289_vm1, %v2288_v17  ;;  %1900 = vmatpush3.bf16.msra.mxu0 %v2044_v40 }
 0x50e   : > { %1901 = vmatprep.subr.bf16.mxu0 %v2288_v17 }
 0x511   : > { %1902 = vmatpush3.bf16.msra.mxu0 %v2045_v41 }
 0x5c4   : > { %v1022_v11 = vpop.f32.mrf.mxu0 }
 0x5c5   : > { %v1028_v13 = vpack.c.bf16 %v1022_v11, %v1022_v11 }
 0x5c6   : > { %v1877_v14 = vpop.f32.mrf.mxu0 }
 0x5c7   : > { %1030 = vst.msk [vmem:[#allocation3] sm:$0xf] %vm1029_vm6, %v1028_v13 }
 0x5c8   : > { %v1025_v15 = vpop.f32.mrf.mxu0 }
 0x5ca   : > { %v1878_v16 = vpop.f32.mrf.mxu0 }
 0x5cc   : > { %v1135_v18 = vpop.f32.mrf.mxu0 }
 0x5cd   : > { %v1834_v20 = vpack.c.bf16 %v1135_v18, %v1135_v18 }
 0x5ce   : > { %v1889_v21 = vpop.f32.mrf.mxu0 }
 0x5cf   : > { %1145 = vrot.lane.b32.xlu1 %v1834_v20, %s2295_s10 }
 0x5d0   : > { %v1138_v22 = vpop.f32.mrf.mxu0 }
 0x5d2   : > { %v1890_v23 = vpop.f32.mrf.mxu0 }
 0x641   : > { %v1146_v24 = vpop.permute.xlu1 %1145 }
 0x642   : > { %1149 = vst.msk [vmem:[#allocation3] sm:$0xf] %vm1148_vm7, %v1146_v24 }
 0x649   : > { %v1150_v25 = vld [vmem:[#allocation3] sm:$0xf] }
 0x64a   : > { %1896 = vmatmul.mubr.msk.bf16.vlgmr.msra.gmra.mxu1 %vm871_vm2, %v1150_v25  ;;  %v1823_v25 = vld [vmem:[%s795_s30] ss:$0 sm:$0xff] }
 0x64b   : > { %1915 = vmatprep.mubr.msk.bf16.mxu1 %vm2289_vm1, %v2288_v17  ;;  %1908 = vmatpush3.bf16.msra.mxu1 %v2046_v51 }
 0x64c   : > { %1909 = vmatprep.subr.bf16.mxu1 %v2288_v17 }
 0x64f   : > { %1910 = vmatpush3.bf16.msra.mxu1 %v2047_v52 }
 0x650   : > { %1911 = vmatprep.subr.bf16.mxu1 %v2288_v17 }
 0x653   : > { %1912 = vmatpush3.bf16.msra.mxu1 %v2048_v53 }
 0x654   : > { %1913 = vmatprep.subr.bf16.mxu1 %v2288_v17 }
 0x657   : > { %1914 = vmatpush3.bf16.msra.mxu1 %v2049_v54 }
 0x70a   : > { %v1211_v27 = vpop.f32.mrf.mxu1 }
 0x70b   : > { %v1212_v28 = vadd.f32 %v1807_v26, %v1211_v27  ;;  %v1824_v27 = vld [vmem:[%s798_s9] ss:$0 sm:$0xff] }
 0x70c   : > { %v1897_v29 = vpop.f32.mrf.mxu1 }
 0x70d   : > { %v1217_v30 = vadd.f32 %v1212_v28, %v2631_v19 }
 0x70e   : > { %v1214_v31 = vpop.f32.mrf.mxu1 }
 0x70f   : > { %v1220_v32 = vsel %vm871_vm2, %v1217_v30, 0.0 }
 0x710   : > { %1221 = vadd.xlane.f32.xlu0 %v1220_v32  ;;  %v1898_v33 = vpop.f32.mrf.mxu1 }
 0x799   : > { %v1222_v35 = vpop.xlane.xlu0 %1221 }
 0x79a   : > { %v1224_v36 = vmul.f32 0.03125, %v1222_v35 }
 0x79c   : > { %v1225_v37 = vsub.f32 %v1217_v30, %v1224_v36 }
 0x79e   : > { %v1226_v38 = vmul.f32 %v1225_v37, %v1225_v37 }
 0x7a0   : > { %v1227_v39 = vsel %vm871_vm2, %v1226_v38, 0.0 }
 0x7a1   : > { %1228 = vadd.xlane.f32.xlu1 %v1227_v39 }
 0x82a   : > { %v1229_v19 = vpop.xlane.xlu1 %1228 }
 0x82b   : > { %v1230_v42 = vmul.f32 0.03125, %v1229_v19 }
 0x82d   : > { %v1231_v43 = vadd.f32 1e-12, %v1230_v42 }
 0x82f   : > { %2058 = vrsqrt.f32 %v1231_v43 }
 0x83c   : > { %v2059_v44 = vpop.eup %2058 }
 0x83d   : > { %v1233_v46 = vmul.f32 %v2059_v44, %v1225_v37 }
 0x83f   : > { %v1240_v48 = vmul.f32 %v1811_v45, %v1233_v46 }
 0x841   : > { %v1247_v49 = vadd.f32 %v1812_v47, %v1240_v48 }
 0x843   : > { %v1248_v50 = vpack.c.bf16 %v1247_v49, %v1247_v49 }
 0x845   : > { %1904 = vmatmul.mubr.msk.bf16.vlgmr.msra.gmra.mxu0 %vm871_vm2, %v1248_v50 }
 0x905   : > { %v1309_v56 = vpop.f32.mrf.mxu0 }
 0x906   : > { %v1310_v57 = vadd.f32 %v1813_v55, %v1309_v56 }
 0x907   : > { %v1905_v58 = vpop.f32.mrf.mxu0 }
 0x908   : > { %v1315_v59 = vmul.f32 %v1310_v57, %v1310_v57 }
 0x909   : > { %v1312_v60 = vpop.f32.mrf.mxu0 }
 0x90a   : > { %v1316_v61 = vmul.f32 %v1315_v59, %v1310_v57 }
 0x90b   : > { %v1906_v62 = vpop.f32.mrf.mxu0 }
 0x90c   : > { %v1317_v63 = vmul.f32 0.044715, %v1316_v61 }
 0x90e   : > { %v1318_v0 = vadd.f32 %v1317_v63, %v1310_v57 }
 0x910   : > { %v1319_v1 = vmul.f32 0.7978846, %v1318_v0 }
 0x912   : > { %2060 = vtanh.f32 %v1319_v1 }
 0x91f   : > { %v2061_v17 = vpop.eup %2060 }
 0x920   : > { %v1321_v2 = vadd.f32 1.0, %v2061_v17 }
 0x922   : > { %v1322_v3 = vmul.f32 0.5, %v1321_v2 }
 0x924   : > { %v1323_v4 = vmul.f32 %v1322_v3, %v1310_v57 }
 0x926   : > { %v1324_v5 = vpack.c.bf16 %v1323_v4, %v1323_v4 }
 0x928   : > { %1916 = vmatmul.mubr.msk.bf16.vlgmr.msra.gmra.mxu1 %vm1364_vm8, %v1324_v5 }
 0x9e8   : > { %v1402_v7 = vpop.f32.mrf.mxu1 }
 0x9e9   : > { %v1403_v8 = vadd.f32 %v1817_v6, %v1402_v7 }
 0x9ea   : > { %v1917_v9 = vpop.f32.mrf.mxu1 }
 0x9eb   : > { %v1408_v10 = vadd.f32 %v1403_v8, %v1247_v49 }
 0x9ec   : > { %v1405_v11 = vpop.f32.mrf.mxu1 }
 0x9ed   : > { %v1411_v12 = vsel %vm871_vm2, %v1408_v10, 0.0 }
 0x9ee   : > { %1412 = vadd.xlane.f32.xlu0 %v1411_v12  ;;  %v1918_v13 = vpop.f32.mrf.mxu1 }
 0xa77   : > { %v1413_v14 = vpop.xlane.xlu0 %1412 }
 0xa78   : > { %v1414_v15 = vmul.f32 0.03125, %v1413_v14 }
 0xa7a   : > { %v1415_v16 = vsub.f32 %v1408_v10, %v1414_v15 }
 0xa7c   : > { %v1416_v18 = vmul.f32 %v1415_v16, %v1415_v16 }
 0xa7e   : > { %v1417_v20 = vsel %vm871_vm2, %v1416_v18, 0.0 }
 0xa7f   : > { %1418 = vadd.xlane.f32.xlu0 %v1417_v20 }
 0xb08   : > { %v1419_v21 = vpop.xlane.xlu0 %1418 }
 0xb09   : > { %v1420_v22 = vmul.f32 0.03125, %v1419_v21 }
 0xb0b   : > { %v1421_v23 = vadd.f32 1e-12, %v1420_v22 }
 0xb0d   : > { %2062 = vrsqrt.f32 %v1421_v23 }
 0xb1a   : > { %v2063_v24 = vpop.eup %2062 }
 0xb1b   : > { %v1423_v26 = vmul.f32 %v2063_v24, %v1415_v16 }
 0xb1d   : > { %v1430_v28 = vmul.f32 %v1823_v25, %v1423_v26  ;;  %1442 = sbr.rel (%p1825_p5) target bundleno = 3049 (0xbe9), region = 108 }
 0xb1f   : > { %v1437_v29 = vadd.f32 %v1824_v27, %v1430_v28 }
 0xb21   : > { %1438 = vst.msk [vmem:[#allocation2] sm:$0xff] %vm871_vm2, %v1437_v29 }
 0xb22   : > { %vm1516_vm9 = vcmask 57344   ;;  %v2296_v30 = vmov 0.0   ;;  %vm2297_vm10 = vmmov 0   ;;  %vm1523_vm11 = vcmask 253952  }
 0xb23   : > { %1919 = vmatprep.subr.mxu0 %v2296_v30  ;;  %1921 = vmatprep.mubr.msk.f32.mxu0 %vm2297_vm10, %v2296_v30  ;;  %v1517_v31 = vsel %vm1516_vm9, %v2655_v34, 0.0 }
 0xb24   : > { %1920 = vmatpush3.msra.mxu0 %v1437_v29  ;;  %1518 = vadd.xlane.f32.xlu0 %v1517_v31 }
 0xb25   : > { %1922 = vmatmul.mubr.msk.f32.vlgmr.msra.gmra.mxu0 %vm966_vm4, %v2655_v34 }
 0xbad   : > { %v1519_v32 = vpop.xlane.xlu0 %1518 }
 0xbae   : > { %v1520_v33 = vmax.f32 %v1519_v32, 1e-09 }
 0xbb0   : > { %2064 = vrcp.f32 %v1520_v33 }
 0xbbd   : > { %v2065_v35 = vpop.eup %2064 }
 0xbe5   : > { %v1512_v36 = vpop.f32.mrf.mxu0 }
 0xbe6   : > { %v1522_v37 = vmul.f32 %v2065_v35, %v1512_v36 }
 0xbe7   : > { %v1923_v38 = vpop.f32.mrf.mxu0 }
 0xbe8   : > { %1524 = vst.msk [vmem:[%s754_s19] sm:$0x1] %vm1523_vm11, %v1522_v37 }
 0xbe9 PF: > { %s2875_s9 = sld [smem:[#allocation21_spill]]  ;;  %s1538_s29 = sshll.u32 %s754_s19, 4  ;;  %s1539_s29 = int_to_ptr.vmem [resolvable:$true] %s1538_s29 }
 0xbea   : > { %s2877_s26 = sld [smem:[#allocation43_spill]]  ;;  %s1526_s1 = scalar_lea.sflag [#allocation6], %s2537_s12 }
 0xbeb   : > { %s2174_s0 = scalar_lea.vmem %s1539_s29, 16  ;;  %s2298_s17 = smov [#allocation12]  }
 0xbec   : > { %p2175_p7 = scmp.ne.s32.totalorder %s1539_s29, %s2174_s0  ;;  %s2178_s4 = sshll.u32 %s2298_s17, 4  ;;  %s2179_s4 = int_to_ptr.vmem [resolvable:$false] %s2178_s4 }
 0xbed   : > { %s2180_s6 = scalar_lea.vmem %s2179_s4, 32  ;;  %p2181_p1 = scmp.lt.s32.totalorder %s1539_s29, %s2179_s4 }
 0xbee   : > { %p2176_p13 = pnand %p2175_p7, %p2489_p0  ;;  %p2182_p2 = scmp.lt.s32.totalorder %s2180_s6, %s2174_s0 }
 0xbef   : > { %s1827_s20 = sshll.u32 %s2875_s9, 4 }
 0xbf0   : > { %s2878_s11 = smov %s2877_s26  ;;  %s1536_s18 = scalar_lea.hbm %s2877_s26, %s1827_s20 }
 0xbf1   : > { %p2177_p3 = pneg %p2176_p13  ;;  %p2183_p12 = por %p2182_p2, %p2181_p1 }
 0xbf3   : > { %p2184_p8 = pnand %p2183_p12, %p2177_p3 }
 0xbf5   : > { %2187 = shalt.err (!%p2184_p8)
}
 0xbf6   : > { %s2188_s23 = scalar_lea.hbm %s1536_s18, 16  ;;  %s2192_s28 = scalar_lea.hbm %s2878_s11, 32 }
 0xbf7   : > { %p2189_p9 = scmp.ne.s32.totalorder %s1536_s18, %s2188_s23  ;;  %p2193_p11 = scmp.lt.s32.totalorder %s1536_s18, %s2878_s11 }
 0xbf8   : > { %p2194_p10 = scmp.lt.s32.totalorder %s2192_s28, %s2188_s23 }
 0xbf9   : > { %p2190_p4 = pnand %p2189_p9, %p2489_p0 }
 0xbfa   : > { %p2195_p5 = por %p2194_p10, %p2193_p11 }
 0xbfb   : > { %p2191_p6 = pneg %p2190_p4 }
 0xbfd   : > { %p2196_p7 = pnand %p2195_p5, %p2191_p6 }
 0xbff   : > { %2199 = shalt.err (!%p2196_p7)
}
 0xc00   : > { %1936 = dma.vmem_to_hbm [thread:$0]  (%p2489_p0), %s1539_s29, 16, %s1536_s18, %s1526_s1  }
 0xc01 PF: > { %s2879_s27 = sld [smem:[#allocation24_spill]] }
 0xc02   : > { %s2880_s15 = sld [smem:[#allocation18_spill]] }
 0xc03   : > { %s2881_s16 = sld [smem:[#allocation25_spill]] }
 0xc07   : > { %p1961_p13 = scmp.ge.s32.totalorder %s2879_s27, 2 }
 0xc08   : > { %s1550_s25 = sand.u32 1, %s2880_s15  }
 0xc09   : > { %p2882_p3 = scmp.ne.s32.totalorder %s2881_s16, 0  ;;  %s1551_s2 = scalar_lea.sflag [#allocation6], %s1550_s25 }
 0xc0b   : > { %p1953_p1 = pnand %p1961_p13, %p2882_p3 }
 0xc0d   : > { %p1954_p2 = pneg %p1953_p1 }
 0xc0f   : > { %2249 = dma.done.wait (%p1954_p2), %s1551_s2, 16  }
 0xc10   : > { %2251 = vsyncadd (%p1954_p2), %s1551_s2, 4294967280  ;;  %s36_s28 = sadd.s32 1, %s2879_s27   ;;  %s2883_s21 = sld [smem:[#allocation19_spill]] }
 0xc11   : > { %p33_p12 = scmp.ge.s32.totalorder %s36_s28, 6   ;;  %s2884_s22 = sld [smem:[#allocation20_spill]] }
 0xc12   : > { %s2885_s23 = sld [smem:[#allocation29_spill]] }
 0xc13   : > { %s2886_s24 = sld [smem:[#allocation22_spill]]  ;;  %35 = sbr.rel (!%p33_p12) target bundleno = 25 (0x19), region = 194 }
 0xc14   : > { %s2887_s25 = sld [smem:[#allocation23_spill]] }
 0xc15   : > { %s2888_s26 = sld [smem:[#allocation26_spill]] }
 0xc16   : > { %s2889_s27 = sld [smem:[#allocation28_spill]] }
 0xc18   :  { %1555 = vsyncpa [#allocation5], 1 }
 0xc19   :  { %1557 = vsyncpa [#allocation5 + $0x1], 1 }
 0xc1a   :  { %1558 = vsyncpa [#allocation8], 1 }
 0xc1b   :  { %1560 = vsyncpa [#allocation8 + $0x1], 1 }
 0xc1c   :  { %1561 = vsyncpa [#allocation11], 1 }
 0xc1d   :  { %1562 = vsyncpa [#allocation6], 1 }
 0xc1e   :  { %1564 = vsyncpa [#allocation6 + $0x1], 1 }

</bundles_post_ra>
